<compile_context>
chip_gen: v5e
topology: v5e:2x2
jax: 0.10.0
libtpu: 0.0.40
codegen_flags: <defaults>
</compile_context>

<pallas_src>
import functools

import jax
import jax.numpy as jnp
from jax import lax
from jax.experimental import pallas as pl
from jax.experimental.pallas import tpu as pltpu


def _round_up(x, m):
    return ((x + m - 1) // m) * m


def _bert_embeddings_kernel(
    ids_ref,      # SMEM (scalar prefetch): (B * S_pad,) int32 token ids, flattened
    wtab_hbm,     # ANY/HBM: (V, H) word-embedding table (never fully loaded into VMEM)
    pos_ref,      # VMEM: (tile_s, H) position-embedding rows for this seq tile
    gamma_ref,    # VMEM: (1, H) f32 LayerNorm weight (pre-cast in wrapper)
    beta_ref,     # VMEM: (1, H) f32 LayerNorm bias  (pre-cast in wrapper)
    o_ref,        # VMEM: (tile_s, H) output tile (batch dim squeezed)
    wrows,        # VMEM scratch: (tile_s, H) gathered word-embedding rows
    sems,         # DMA semaphores: (lookahead,)
    *,
    eps,
    tile_s,
    lookahead,
    hidden,
    s_pad,
):
    # Grid is (n_s, B): seq tiles outer, batch inner, so the pos tile (index depends only
    # on the outer axis) is not re-fetched while iterating over the batch.
    s = pl.program_id(0)
    b = pl.program_id(1)
    base = b * s_pad + s * tile_s   # flattened offset of this tile's first token id

    def row_copy(src_row, dst_row, sem_idx):
        # Single helper so start/wait always agree on the transfer size.
        return pltpu.make_async_copy(
            wtab_hbm.at[pl.ds(src_row, 1)],
            wrows.at[pl.ds(dst_row, 1)],
            sems.at[sem_idx],
        )

    def start_row(r):
        tok = ids_ref[base + r]
        row_copy(tok, r, r % lookahead).start()

    def wait_row(r):
        # src index is shape-only; wait only needs the transfer size + semaphore.
        row_copy(0, r, r % lookahead).wait()

    # Prime the gather pipeline: `lookahead` row DMAs in flight (lookahead <= tile_s).
    for r in range(lookahead):
        start_row(r)

    # Steady state: unconditional wait(r) then start(r + lookahead) reusing the same
    # semaphore.  The next token id is read from SMEM *before* the wait, and the loop is
    # partially unrolled so the scheduler can interleave scalar/DMA-issue work across rows.
    if tile_s > lookahead:
        def issue_body(r, carry):
            nxt = r + lookahead
            tok_next = ids_ref[base + nxt]          # hoisted SMEM read (before the wait)
            sem_idx = r % lookahead
            row_copy(0, r, sem_idx).wait()
            row_copy(tok_next, nxt, sem_idx).start()
            return carry

        lax.fori_loop(0, tile_s - lookahead, issue_body, 0, unroll=8)

    # Tail: bare waits for the last `lookahead` rows (static, fully unrolled).
    for r in range(tile_s - lookahead, tile_s):
        wait_row(r)

    # word + position embeddings, then LayerNorm over H (f32 stats, single fused pass).
    x = wrows[...].astype(jnp.float32) + pos_ref[...].astype(jnp.float32)
    inv_h = jnp.float32(1.0 / hidden)
    s1 = jnp.sum(x, axis=-1, keepdims=True)
    s2 = jnp.sum(x * x, axis=-1, keepdims=True)
    mean = s1 * inv_h
    var = jnp.maximum(s2 * inv_h - mean * mean, jnp.float32(0.0))  # guard cancellation
    inv = lax.rsqrt(var + jnp.float32(eps))
    y = (x - mean) * inv * gamma_ref[...] + beta_ref[...]
    # Dropout is identity in eval/inference mode.
    # TODO(synk): training-mode dropout would need pltpu.prng_seed/prng_random_bits masking.
    o_ref[...] = y.astype(o_ref.dtype)


def bert_embeddings(
    input_ids,        # (B, S) int token ids
    word_table,       # (V, H) word-embedding table
    pos_table,        # (P, H) position-embedding table (P >= past + S)
    gamma,            # (H,) LayerNorm weight
    beta,             # (H,) LayerNorm bias
    *,
    eps=1e-12,
    past_key_values_length=0,
    tile_s=256,
    lookahead=32,
):
    B, S = input_ids.shape
    V, H = word_table.shape
    if H % 128 != 0:
        raise ValueError("hidden_size must be a multiple of 128 (TPU lane width)")
    if past_key_values_length + S > pos_table.shape[0]:
        raise ValueError("sequence length exceeds max_position_embeddings")

    # Row tile: multiple of 8 sublanes, no larger than the (padded) sequence.
    tile_s = max(8, min(tile_s, _round_up(S, 8)))
    tile_s = _round_up(tile_s, 8)
    n_s = pl.cdiv(S, tile_s)
    S_pad = n_s * tile_s
    lookahead = max(1, min(lookahead, tile_s))

    ids = jnp.asarray(input_ids, jnp.int32)
    if S_pad != S:
        ids = jnp.pad(ids, ((0, 0), (0, S_pad - S)))  # pad with token 0; rows sliced off below
    ids = ids.reshape(B * S_pad)                        # flat 1D SMEM layout (no sublane padding)

    # Absolute position rows for [past, past + S), padded to S_pad rows for exact tiling.
    pos = pos_table[past_key_values_length: past_key_values_length + S]
    if S_pad != S:
        pos = jnp.pad(pos, ((0, S_pad - S), (0, 0)))

    gamma2d = jnp.asarray(gamma, jnp.float32).reshape(1, H)
    beta2d = jnp.asarray(beta, jnp.float32).reshape(1, H)

    out_dtype = word_table.dtype
    w_b = jnp.dtype(word_table.dtype).itemsize
    p_b = jnp.dtype(pos.dtype).itemsize
    o_b = jnp.dtype(out_dtype).itemsize
    vmem_needed = tile_s * H * (w_b + 2 * p_b + 2 * o_b) + 4 * H * 4
    # Explicit scoped-VMEM limit: enough headroom on all generations, capped for v7x (64 MiB).
    vmem_limit = int(min(max(2 * vmem_needed + (2 << 20), 32 << 20), 64 << 20))

    kernel = functools.partial(
        _bert_embeddings_kernel,
        eps=eps, tile_s=tile_s, lookahead=lookahead, hidden=H, s_pad=S_pad,
    )

    # TODO(synk): on v5e/v6e (128 MiB VMEM) a table-resident fast path (copy the whole
    # word table to VMEM once and gather in-VMEM) would remove all per-row HBM DMAs for
    # bf16 BERT-base-sized tables; kept on the HBM-gather path here for v7x correctness.
    out = pl.pallas_call(
        kernel,
        out_shape=jax.ShapeDtypeStruct((B, S_pad, H), out_dtype),
        grid_spec=pltpu.PrefetchScalarGridSpec(
            num_scalar_prefetch=1,
            grid=(n_s, B),                                            # seq outer, batch inner
            in_specs=[
                pl.BlockSpec(memory_space=pl.ANY),                    # word table stays in HBM
                pl.BlockSpec((tile_s, H), lambda s, b, ids: (s, 0)),  # pos tile, resident over b
                pl.BlockSpec((1, H), lambda s, b, ids: (0, 0)),       # LN gamma (constant)
                pl.BlockSpec((1, H), lambda s, b, ids: (0, 0)),       # LN beta  (constant)
            ],
            out_specs=pl.BlockSpec(
                (pl.Squeezed(), tile_s, H), lambda s, b, ids: (b, s, 0)
            ),
            scratch_shapes=[
                pltpu.VMEM((tile_s, H), word_table.dtype),   # gathered word rows
                pltpu.SemaphoreType.DMA((lookahead,)),       # bounded in-flight gather DMAs
            ],
        ),
        compiler_params=pltpu.CompilerParams(
            dimension_semantics=("parallel", "parallel"),
            vmem_limit_bytes=vmem_limit,
        ),
    )(ids, word_table, pos, gamma2d, beta2d)

    return out[:, :S, :]


def _reference(input_ids, word_table, pos_table, gamma, beta, eps=1e-12):
    we = jnp.take(word_table, input_ids, axis=0)                 # (B, S, H)
    pe = pos_table[: input_ids.shape[1]][None]                   # (1, S, H)
    x = (we + pe).astype(jnp.float32)
    mean = jnp.mean(x, axis=-1, keepdims=True)
    var = jnp.mean((x - mean) ** 2, axis=-1, keepdims=True)
    return (x - mean) * lax.rsqrt(var + eps) * gamma + beta


if __name__ == "__main__":
    def run_case(B, S, H, V, P, **kw):
        key = jax.random.PRNGKey(0)
        k_ids, k_w, k_p, k_g, k_b = jax.random.split(key, 5)
        input_ids = jax.random.randint(k_ids, (B, S), 0, V, dtype=jnp.int32)
        word_table = jax.random.normal(k_w, (V, H), dtype=jnp.float32) * 0.02
        word_table = word_table.at[0].set(0.0)   # padding_idx row (forward is a plain lookup)
        pos_table = jax.random.normal(k_p, (P, H), dtype=jnp.float32) * 0.02
        gamma = 1.0 + 0.1 * jax.random.normal(k_g, (H,), dtype=jnp.float32)
        beta = 0.1 * jax.random.normal(k_b, (H,), dtype=jnp.float32)

        out = bert_embeddings(input_ids, word_table, pos_table, gamma, beta, eps=1e-12, **kw)
        out = jax.block_until_ready(out)

        ref = _reference(input_ids, word_table, pos_table, gamma, beta, 1e-12)
        assert out.shape == (B, S, H)
        assert jnp.allclose(out, ref, atol=1e-4, rtol=1e-4), "mismatch vs reference"

    # Case 1: ragged short sequence (exercises cdiv/padding + the tail-only wait path).
    run_case(B=2, S=13, H=128, V=512, P=64)
    # Case 2: two seq tiles x two batches (exercises pos-tile reuse across the inner batch
    # axis, the unrolled steady-state gather loop, and ragged-tail padding).
    run_case(B=2, S=40, H=256, V=300, P=64, tile_s=24, lookahead=8)

    print("KERNEL_OK")
</pallas_src>

<mosaic_0001>
module attributes {stable_mosaic.version = 11 : i64} {
  func.func @_bert_embeddings_kernel(%arg0: i32, %arg1: i32, %arg2: memref<32xi32, #tpu.memory_space<smem>>, %arg3: memref<512x128xf32, #tpu.memory_space<any>>, %arg4: memref<16x128xf32, #tpu.memory_space<vmem>>, %arg5: memref<1x128xf32, #tpu.memory_space<vmem>>, %arg6: memref<1x128xf32, #tpu.memory_space<vmem>>, %arg7: memref<1x16x128xf32, #tpu.memory_space<vmem>>, %arg8: memref<16x128xf32, #tpu.memory_space<vmem>>, %arg9: memref<16x!tpu.dma_semaphore, #tpu.memory_space<semaphore_mem>>) attributes {dimension_semantics = [#tpu.dimension_semantics<parallel>, #tpu.dimension_semantics<parallel>], iteration_bounds = array<i64: 1, 2>, scalar_prefetch = 1 : i64, scratch_operands = 2 : i64, tpu.core_type = #tpu.core_type<tc>, window_params = [{}, {transform_indices = @transform_1, window_bounds = array<i64: 16, 128>}, {pipeline_mode = #tpu.pipeline_mode<synchronous>, transform_indices = @transform_2, window_bounds = array<i64: 1, 128>}, {pipeline_mode = #tpu.pipeline_mode<synchronous>, transform_indices = @transform_3, window_bounds = array<i64: 1, 128>}, {transform_indices = @transform_4, window_bounds = array<i64: 1, 16, 128>}]} {
    %c16_i32 = arith.constant 16 : i32
    %0 = arith.muli %arg1, %c16_i32 : i32
    %c16_i32_0 = arith.constant 16 : i32
    %1 = arith.muli %arg0, %c16_i32_0 : i32
    %2 = arith.addi %0, %1 : i32
    %c0_i32 = arith.constant 0 : i32
    %3 = arith.addi %2, %c0_i32 : i32
    %4 = arith.index_cast %3 : i32 to index
    %5 = memref.load %arg2[%4] : memref<32xi32, #tpu.memory_space<smem>>
    %c0_i32_1 = arith.constant 0 : i32
    %c0_i32_2 = arith.constant 0 : i32
    %6 = tpu.memref_slice %arg3[%5, %c0_i32_2] : memref<512x128xf32, #tpu.memory_space<any>> -> memref<1x128xf32, #tpu.memory_space<any>>
    %c0_i32_3 = arith.constant 0 : i32
    %c0_i32_4 = arith.constant 0 : i32
    %7 = tpu.memref_slice %arg8[%c0_i32_3, %c0_i32_4] : memref<16x128xf32, #tpu.memory_space<vmem>> -> memref<1x128xf32, #tpu.memory_space<vmem>>
    %8 = tpu.memref_slice %arg9[%c0_i32_1] : memref<16x!tpu.dma_semaphore, #tpu.memory_space<semaphore_mem>> -> memref<1x!tpu.dma_semaphore, #tpu.memory_space<semaphore_mem>>
    %9 = tpu.memref_squeeze %8 : memref<1x!tpu.dma_semaphore, #tpu.memory_space<semaphore_mem>> -> memref<!tpu.dma_semaphore, #tpu.memory_space<semaphore_mem>>
    tpu.enqueue_dma source(%6 : memref<1x128xf32, #tpu.memory_space<any>>) target(%7 : memref<1x128xf32, #tpu.memory_space<vmem>>) target_semaphore(%9 : memref<!tpu.dma_semaphore, #tpu.memory_space<semaphore_mem>>)
    %c1_i32 = arith.constant 1 : i32
    %10 = arith.addi %2, %c1_i32 : i32
    %11 = arith.index_cast %10 : i32 to index
    %12 = memref.load %arg2[%11] : memref<32xi32, #tpu.memory_space<smem>>
    %c1_i32_5 = arith.constant 1 : i32
    %c0_i32_6 = arith.constant 0 : i32
    %13 = tpu.memref_slice %arg3[%12, %c0_i32_6] : memref<512x128xf32, #tpu.memory_space<any>> -> memref<1x128xf32, #tpu.memory_space<any>>
    %c1_i32_7 = arith.constant 1 : i32
    %c0_i32_8 = arith.constant 0 : i32
    %14 = tpu.memref_slice %arg8[%c1_i32_7, %c0_i32_8] : memref<16x128xf32, #tpu.memory_space<vmem>> -> memref<1x128xf32, #tpu.memory_space<vmem>>
    %15 = tpu.memref_slice %arg9[%c1_i32_5] : memref<16x!tpu.dma_semaphore, #tpu.memory_space<semaphore_mem>> -> memref<1x!tpu.dma_semaphore, #tpu.memory_space<semaphore_mem>>
    %16 = tpu.memref_squeeze %15 : memref<1x!tpu.dma_semaphore, #tpu.memory_space<semaphore_mem>> -> memref<!tpu.dma_semaphore, #tpu.memory_space<semaphore_mem>>
    tpu.enqueue_dma source(%13 : memref<1x128xf32, #tpu.memory_space<any>>) target(%14 : memref<1x128xf32, #tpu.memory_space<vmem>>) target_semaphore(%16 : memref<!tpu.dma_semaphore, #tpu.memory_space<semaphore_mem>>)
    %c2_i32 = arith.constant 2 : i32
    %17 = arith.addi %2, %c2_i32 : i32
    %18 = arith.index_cast %17 : i32 to index
    %19 = memref.load %arg2[%18] : memref<32xi32, #tpu.memory_space<smem>>
    %c2_i32_9 = arith.constant 2 : i32
    %c0_i32_10 = arith.constant 0 : i32
    %20 = tpu.memref_slice %arg3[%19, %c0_i32_10] : memref<512x128xf32, #tpu.memory_space<any>> -> memref<1x128xf32, #tpu.memory_space<any>>
    %c2_i32_11 = arith.constant 2 : i32
    %c0_i32_12 = arith.constant 0 : i32
    %21 = tpu.memref_slice %arg8[%c2_i32_11, %c0_i32_12] : memref<16x128xf32, #tpu.memory_space<vmem>> -> memref<1x128xf32, #tpu.memory_space<vmem>>
    %22 = tpu.memref_slice %arg9[%c2_i32_9] : memref<16x!tpu.dma_semaphore, #tpu.memory_space<semaphore_mem>> -> memref<1x!tpu.dma_semaphore, #tpu.memory_space<semaphore_mem>>
    %23 = tpu.memref_squeeze %22 : memref<1x!tpu.dma_semaphore, #tpu.memory_space<semaphore_mem>> -> memref<!tpu.dma_semaphore, #tpu.memory_space<semaphore_mem>>
    tpu.enqueue_dma source(%20 : memref<1x128xf32, #tpu.memory_space<any>>) target(%21 : memref<1x128xf32, #tpu.memory_space<vmem>>) target_semaphore(%23 : memref<!tpu.dma_semaphore, #tpu.memory_space<semaphore_mem>>)
    %c3_i32 = arith.constant 3 : i32
    %24 = arith.addi %2, %c3_i32 : i32
    %25 = arith.index_cast %24 : i32 to index
    %26 = memref.load %arg2[%25] : memref<32xi32, #tpu.memory_space<smem>>
    %c3_i32_13 = arith.constant 3 : i32
    %c0_i32_14 = arith.constant 0 : i32
    %27 = tpu.memref_slice %arg3[%26, %c0_i32_14] : memref<512x128xf32, #tpu.memory_space<any>> -> memref<1x128xf32, #tpu.memory_space<any>>
    %c3_i32_15 = arith.constant 3 : i32
    %c0_i32_16 = arith.constant 0 : i32
    %28 = tpu.memref_slice %arg8[%c3_i32_15, %c0_i32_16] : memref<16x128xf32, #tpu.memory_space<vmem>> -> memref<1x128xf32, #tpu.memory_space<vmem>>
    %29 = tpu.memref_slice %arg9[%c3_i32_13] : memref<16x!tpu.dma_semaphore, #tpu.memory_space<semaphore_mem>> -> memref<1x!tpu.dma_semaphore, #tpu.memory_space<semaphore_mem>>
    %30 = tpu.memref_squeeze %29 : memref<1x!tpu.dma_semaphore, #tpu.memory_space<semaphore_mem>> -> memref<!tpu.dma_semaphore, #tpu.memory_space<semaphore_mem>>
    tpu.enqueue_dma source(%27 : memref<1x128xf32, #tpu.memory_space<any>>) target(%28 : memref<1x128xf32, #tpu.memory_space<vmem>>) target_semaphore(%30 : memref<!tpu.dma_semaphore, #tpu.memory_space<semaphore_mem>>)
    %c4_i32 = arith.constant 4 : i32
    %31 = arith.addi %2, %c4_i32 : i32
    %32 = arith.index_cast %31 : i32 to index
    %33 = memref.load %arg2[%32] : memref<32xi32, #tpu.memory_space<smem>>
    %c4_i32_17 = arith.constant 4 : i32
    %c0_i32_18 = arith.constant 0 : i32
    %34 = tpu.memref_slice %arg3[%33, %c0_i32_18] : memref<512x128xf32, #tpu.memory_space<any>> -> memref<1x128xf32, #tpu.memory_space<any>>
    %c4_i32_19 = arith.constant 4 : i32
    %c0_i32_20 = arith.constant 0 : i32
    %35 = tpu.memref_slice %arg8[%c4_i32_19, %c0_i32_20] : memref<16x128xf32, #tpu.memory_space<vmem>> -> memref<1x128xf32, #tpu.memory_space<vmem>>
    %36 = tpu.memref_slice %arg9[%c4_i32_17] : memref<16x!tpu.dma_semaphore, #tpu.memory_space<semaphore_mem>> -> memref<1x!tpu.dma_semaphore, #tpu.memory_space<semaphore_mem>>
    %37 = tpu.memref_squeeze %36 : memref<1x!tpu.dma_semaphore, #tpu.memory_space<semaphore_mem>> -> memref<!tpu.dma_semaphore, #tpu.memory_space<semaphore_mem>>
    tpu.enqueue_dma source(%34 : memref<1x128xf32, #tpu.memory_space<any>>) target(%35 : memref<1x128xf32, #tpu.memory_space<vmem>>) target_semaphore(%37 : memref<!tpu.dma_semaphore, #tpu.memory_space<semaphore_mem>>)
    %c5_i32 = arith.constant 5 : i32
    %38 = arith.addi %2, %c5_i32 : i32
    %39 = arith.index_cast %38 : i32 to index
    %40 = memref.load %arg2[%39] : memref<32xi32, #tpu.memory_space<smem>>
    %c5_i32_21 = arith.constant 5 : i32
    %c0_i32_22 = arith.constant 0 : i32
    %41 = tpu.memref_slice %arg3[%40, %c0_i32_22] : memref<512x128xf32, #tpu.memory_space<any>> -> memref<1x128xf32, #tpu.memory_space<any>>
    %c5_i32_23 = arith.constant 5 : i32
    %c0_i32_24 = arith.constant 0 : i32
    %42 = tpu.memref_slice %arg8[%c5_i32_23, %c0_i32_24] : memref<16x128xf32, #tpu.memory_space<vmem>> -> memref<1x128xf32, #tpu.memory_space<vmem>>
    %43 = tpu.memref_slice %arg9[%c5_i32_21] : memref<16x!tpu.dma_semaphore, #tpu.memory_space<semaphore_mem>> -> memref<1x!tpu.dma_semaphore, #tpu.memory_space<semaphore_mem>>
    %44 = tpu.memref_squeeze %43 : memref<1x!tpu.dma_semaphore, #tpu.memory_space<semaphore_mem>> -> memref<!tpu.dma_semaphore, #tpu.memory_space<semaphore_mem>>
    tpu.enqueue_dma source(%41 : memref<1x128xf32, #tpu.memory_space<any>>) target(%42 : memref<1x128xf32, #tpu.memory_space<vmem>>) target_semaphore(%44 : memref<!tpu.dma_semaphore, #tpu.memory_space<semaphore_mem>>)
    %c6_i32 = arith.constant 6 : i32
    %45 = arith.addi %2, %c6_i32 : i32
    %46 = arith.index_cast %45 : i32 to index
    %47 = memref.load %arg2[%46] : memref<32xi32, #tpu.memory_space<smem>>
    %c6_i32_25 = arith.constant 6 : i32
    %c0_i32_26 = arith.constant 0 : i32
    %48 = tpu.memref_slice %arg3[%47, %c0_i32_26] : memref<512x128xf32, #tpu.memory_space<any>> -> memref<1x128xf32, #tpu.memory_space<any>>
    %c6_i32_27 = arith.constant 6 : i32
    %c0_i32_28 = arith.constant 0 : i32
    %49 = tpu.memref_slice %arg8[%c6_i32_27, %c0_i32_28] : memref<16x128xf32, #tpu.memory_space<vmem>> -> memref<1x128xf32, #tpu.memory_space<vmem>>
    %50 = tpu.memref_slice %arg9[%c6_i32_25] : memref<16x!tpu.dma_semaphore, #tpu.memory_space<semaphore_mem>> -> memref<1x!tpu.dma_semaphore, #tpu.memory_space<semaphore_mem>>
    %51 = tpu.memref_squeeze %50 : memref<1x!tpu.dma_semaphore, #tpu.memory_space<semaphore_mem>> -> memref<!tpu.dma_semaphore, #tpu.memory_space<semaphore_mem>>
    tpu.enqueue_dma source(%48 : memref<1x128xf32, #tpu.memory_space<any>>) target(%49 : memref<1x128xf32, #tpu.memory_space<vmem>>) target_semaphore(%51 : memref<!tpu.dma_semaphore, #tpu.memory_space<semaphore_mem>>)
    %c7_i32 = arith.constant 7 : i32
    %52 = arith.addi %2, %c7_i32 : i32
    %53 = arith.index_cast %52 : i32 to index
    %54 = memref.load %arg2[%53] : memref<32xi32, #tpu.memory_space<smem>>
    %c7_i32_29 = arith.constant 7 : i32
    %c0_i32_30 = arith.constant 0 : i32
    %55 = tpu.memref_slice %arg3[%54, %c0_i32_30] : memref<512x128xf32, #tpu.memory_space<any>> -> memref<1x128xf32, #tpu.memory_space<any>>
    %c7_i32_31 = arith.constant 7 : i32
    %c0_i32_32 = arith.constant 0 : i32
    %56 = tpu.memref_slice %arg8[%c7_i32_31, %c0_i32_32] : memref<16x128xf32, #tpu.memory_space<vmem>> -> memref<1x128xf32, #tpu.memory_space<vmem>>
    %57 = tpu.memref_slice %arg9[%c7_i32_29] : memref<16x!tpu.dma_semaphore, #tpu.memory_space<semaphore_mem>> -> memref<1x!tpu.dma_semaphore, #tpu.memory_space<semaphore_mem>>
    %58 = tpu.memref_squeeze %57 : memref<1x!tpu.dma_semaphore, #tpu.memory_space<semaphore_mem>> -> memref<!tpu.dma_semaphore, #tpu.memory_space<semaphore_mem>>
    tpu.enqueue_dma source(%55 : memref<1x128xf32, #tpu.memory_space<any>>) target(%56 : memref<1x128xf32, #tpu.memory_space<vmem>>) target_semaphore(%58 : memref<!tpu.dma_semaphore, #tpu.memory_space<semaphore_mem>>)
    %c8_i32 = arith.constant 8 : i32
    %59 = arith.addi %2, %c8_i32 : i32
    %60 = arith.index_cast %59 : i32 to index
    %61 = memref.load %arg2[%60] : memref<32xi32, #tpu.memory_space<smem>>
    %c8_i32_33 = arith.constant 8 : i32
    %c0_i32_34 = arith.constant 0 : i32
    %62 = tpu.memref_slice %arg3[%61, %c0_i32_34] : memref<512x128xf32, #tpu.memory_space<any>> -> memref<1x128xf32, #tpu.memory_space<any>>
    %c8_i32_35 = arith.constant 8 : i32
    %c0_i32_36 = arith.constant 0 : i32
    %63 = tpu.memref_slice %arg8[%c8_i32_35, %c0_i32_36] : memref<16x128xf32, #tpu.memory_space<vmem>> -> memref<1x128xf32, #tpu.memory_space<vmem>>
    %64 = tpu.memref_slice %arg9[%c8_i32_33] : memref<16x!tpu.dma_semaphore, #tpu.memory_space<semaphore_mem>> -> memref<1x!tpu.dma_semaphore, #tpu.memory_space<semaphore_mem>>
    %65 = tpu.memref_squeeze %64 : memref<1x!tpu.dma_semaphore, #tpu.memory_space<semaphore_mem>> -> memref<!tpu.dma_semaphore, #tpu.memory_space<semaphore_mem>>
    tpu.enqueue_dma source(%62 : memref<1x128xf32, #tpu.memory_space<any>>) target(%63 : memref<1x128xf32, #tpu.memory_space<vmem>>) target_semaphore(%65 : memref<!tpu.dma_semaphore, #tpu.memory_space<semaphore_mem>>)
    %c9_i32 = arith.constant 9 : i32
    %66 = arith.addi %2, %c9_i32 : i32
    %67 = arith.index_cast %66 : i32 to index
    %68 = memref.load %arg2[%67] : memref<32xi32, #tpu.memory_space<smem>>
    %c9_i32_37 = arith.constant 9 : i32
    %c0_i32_38 = arith.constant 0 : i32
    %69 = tpu.memref_slice %arg3[%68, %c0_i32_38] : memref<512x128xf32, #tpu.memory_space<any>> -> memref<1x128xf32, #tpu.memory_space<any>>
    %c9_i32_39 = arith.constant 9 : i32
    %c0_i32_40 = arith.constant 0 : i32
    %70 = tpu.memref_slice %arg8[%c9_i32_39, %c0_i32_40] : memref<16x128xf32, #tpu.memory_space<vmem>> -> memref<1x128xf32, #tpu.memory_space<vmem>>
    %71 = tpu.memref_slice %arg9[%c9_i32_37] : memref<16x!tpu.dma_semaphore, #tpu.memory_space<semaphore_mem>> -> memref<1x!tpu.dma_semaphore, #tpu.memory_space<semaphore_mem>>
    %72 = tpu.memref_squeeze %71 : memref<1x!tpu.dma_semaphore, #tpu.memory_space<semaphore_mem>> -> memref<!tpu.dma_semaphore, #tpu.memory_space<semaphore_mem>>
    tpu.enqueue_dma source(%69 : memref<1x128xf32, #tpu.memory_space<any>>) target(%70 : memref<1x128xf32, #tpu.memory_space<vmem>>) target_semaphore(%72 : memref<!tpu.dma_semaphore, #tpu.memory_space<semaphore_mem>>)
    %c10_i32 = arith.constant 10 : i32
    %73 = arith.addi %2, %c10_i32 : i32
    %74 = arith.index_cast %73 : i32 to index
    %75 = memref.load %arg2[%74] : memref<32xi32, #tpu.memory_space<smem>>
    %c10_i32_41 = arith.constant 10 : i32
    %c0_i32_42 = arith.constant 0 : i32
    %76 = tpu.memref_slice %arg3[%75, %c0_i32_42] : memref<512x128xf32, #tpu.memory_space<any>> -> memref<1x128xf32, #tpu.memory_space<any>>
    %c10_i32_43 = arith.constant 10 : i32
    %c0_i32_44 = arith.constant 0 : i32
    %77 = tpu.memref_slice %arg8[%c10_i32_43, %c0_i32_44] : memref<16x128xf32, #tpu.memory_space<vmem>> -> memref<1x128xf32, #tpu.memory_space<vmem>>
    %78 = tpu.memref_slice %arg9[%c10_i32_41] : memref<16x!tpu.dma_semaphore, #tpu.memory_space<semaphore_mem>> -> memref<1x!tpu.dma_semaphore, #tpu.memory_space<semaphore_mem>>
    %79 = tpu.memref_squeeze %78 : memref<1x!tpu.dma_semaphore, #tpu.memory_space<semaphore_mem>> -> memref<!tpu.dma_semaphore, #tpu.memory_space<semaphore_mem>>
    tpu.enqueue_dma source(%76 : memref<1x128xf32, #tpu.memory_space<any>>) target(%77 : memref<1x128xf32, #tpu.memory_space<vmem>>) target_semaphore(%79 : memref<!tpu.dma_semaphore, #tpu.memory_space<semaphore_mem>>)
    %c11_i32 = arith.constant 11 : i32
    %80 = arith.addi %2, %c11_i32 : i32
    %81 = arith.index_cast %80 : i32 to index
    %82 = memref.load %arg2[%81] : memref<32xi32, #tpu.memory_space<smem>>
    %c11_i32_45 = arith.constant 11 : i32
    %c0_i32_46 = arith.constant 0 : i32
    %83 = tpu.memref_slice %arg3[%82, %c0_i32_46] : memref<512x128xf32, #tpu.memory_space<any>> -> memref<1x128xf32, #tpu.memory_space<any>>
    %c11_i32_47 = arith.constant 11 : i32
    %c0_i32_48 = arith.constant 0 : i32
    %84 = tpu.memref_slice %arg8[%c11_i32_47, %c0_i32_48] : memref<16x128xf32, #tpu.memory_space<vmem>> -> memref<1x128xf32, #tpu.memory_space<vmem>>
    %85 = tpu.memref_slice %arg9[%c11_i32_45] : memref<16x!tpu.dma_semaphore, #tpu.memory_space<semaphore_mem>> -> memref<1x!tpu.dma_semaphore, #tpu.memory_space<semaphore_mem>>
    %86 = tpu.memref_squeeze %85 : memref<1x!tpu.dma_semaphore, #tpu.memory_space<semaphore_mem>> -> memref<!tpu.dma_semaphore, #tpu.memory_space<semaphore_mem>>
    tpu.enqueue_dma source(%83 : memref<1x128xf32, #tpu.memory_space<any>>) target(%84 : memref<1x128xf32, #tpu.memory_space<vmem>>) target_semaphore(%86 : memref<!tpu.dma_semaphore, #tpu.memory_space<semaphore_mem>>)
    %c12_i32 = arith.constant 12 : i32
    %87 = arith.addi %2, %c12_i32 : i32
    %88 = arith.index_cast %87 : i32 to index
    %89 = memref.load %arg2[%88] : memref<32xi32, #tpu.memory_space<smem>>
    %c12_i32_49 = arith.constant 12 : i32
    %c0_i32_50 = arith.constant 0 : i32
    %90 = tpu.memref_slice %arg3[%89, %c0_i32_50] : memref<512x128xf32, #tpu.memory_space<any>> -> memref<1x128xf32, #tpu.memory_space<any>>
    %c12_i32_51 = arith.constant 12 : i32
    %c0_i32_52 = arith.constant 0 : i32
    %91 = tpu.memref_slice %arg8[%c12_i32_51, %c0_i32_52] : memref<16x128xf32, #tpu.memory_space<vmem>> -> memref<1x128xf32, #tpu.memory_space<vmem>>
    %92 = tpu.memref_slice %arg9[%c12_i32_49] : memref<16x!tpu.dma_semaphore, #tpu.memory_space<semaphore_mem>> -> memref<1x!tpu.dma_semaphore, #tpu.memory_space<semaphore_mem>>
    %93 = tpu.memref_squeeze %92 : memref<1x!tpu.dma_semaphore, #tpu.memory_space<semaphore_mem>> -> memref<!tpu.dma_semaphore, #tpu.memory_space<semaphore_mem>>
    tpu.enqueue_dma source(%90 : memref<1x128xf32, #tpu.memory_space<any>>) target(%91 : memref<1x128xf32, #tpu.memory_space<vmem>>) target_semaphore(%93 : memref<!tpu.dma_semaphore, #tpu.memory_space<semaphore_mem>>)
    %c13_i32 = arith.constant 13 : i32
    %94 = arith.addi %2, %c13_i32 : i32
    %95 = arith.index_cast %94 : i32 to index
    %96 = memref.load %arg2[%95] : memref<32xi32, #tpu.memory_space<smem>>
    %c13_i32_53 = arith.constant 13 : i32
    %c0_i32_54 = arith.constant 0 : i32
    %97 = tpu.memref_slice %arg3[%96, %c0_i32_54] : memref<512x128xf32, #tpu.memory_space<any>> -> memref<1x128xf32, #tpu.memory_space<any>>
    %c13_i32_55 = arith.constant 13 : i32
    %c0_i32_56 = arith.constant 0 : i32
    %98 = tpu.memref_slice %arg8[%c13_i32_55, %c0_i32_56] : memref<16x128xf32, #tpu.memory_space<vmem>> -> memref<1x128xf32, #tpu.memory_space<vmem>>
    %99 = tpu.memref_slice %arg9[%c13_i32_53] : memref<16x!tpu.dma_semaphore, #tpu.memory_space<semaphore_mem>> -> memref<1x!tpu.dma_semaphore, #tpu.memory_space<semaphore_mem>>
    %100 = tpu.memref_squeeze %99 : memref<1x!tpu.dma_semaphore, #tpu.memory_space<semaphore_mem>> -> memref<!tpu.dma_semaphore, #tpu.memory_space<semaphore_mem>>
    tpu.enqueue_dma source(%97 : memref<1x128xf32, #tpu.memory_space<any>>) target(%98 : memref<1x128xf32, #tpu.memory_space<vmem>>) target_semaphore(%100 : memref<!tpu.dma_semaphore, #tpu.memory_space<semaphore_mem>>)
    %c14_i32 = arith.constant 14 : i32
    %101 = arith.addi %2, %c14_i32 : i32
    %102 = arith.index_cast %101 : i32 to index
    %103 = memref.load %arg2[%102] : memref<32xi32, #tpu.memory_space<smem>>
    %c14_i32_57 = arith.constant 14 : i32
    %c0_i32_58 = arith.constant 0 : i32
    %104 = tpu.memref_slice %arg3[%103, %c0_i32_58] : memref<512x128xf32, #tpu.memory_space<any>> -> memref<1x128xf32, #tpu.memory_space<any>>
    %c14_i32_59 = arith.constant 14 : i32
    %c0_i32_60 = arith.constant 0 : i32
    %105 = tpu.memref_slice %arg8[%c14_i32_59, %c0_i32_60] : memref<16x128xf32, #tpu.memory_space<vmem>> -> memref<1x128xf32, #tpu.memory_space<vmem>>
    %106 = tpu.memref_slice %arg9[%c14_i32_57] : memref<16x!tpu.dma_semaphore, #tpu.memory_space<semaphore_mem>> -> memref<1x!tpu.dma_semaphore, #tpu.memory_space<semaphore_mem>>
    %107 = tpu.memref_squeeze %106 : memref<1x!tpu.dma_semaphore, #tpu.memory_space<semaphore_mem>> -> memref<!tpu.dma_semaphore, #tpu.memory_space<semaphore_mem>>
    tpu.enqueue_dma source(%104 : memref<1x128xf32, #tpu.memory_space<any>>) target(%105 : memref<1x128xf32, #tpu.memory_space<vmem>>) target_semaphore(%107 : memref<!tpu.dma_semaphore, #tpu.memory_space<semaphore_mem>>)
    %c15_i32 = arith.constant 15 : i32
    %108 = arith.addi %2, %c15_i32 : i32
    %109 = arith.index_cast %108 : i32 to index
    %110 = memref.load %arg2[%109] : memref<32xi32, #tpu.memory_space<smem>>
    %c15_i32_61 = arith.constant 15 : i32
    %c0_i32_62 = arith.constant 0 : i32
    %111 = tpu.memref_slice %arg3[%110, %c0_i32_62] : memref<512x128xf32, #tpu.memory_space<any>> -> memref<1x128xf32, #tpu.memory_space<any>>
    %c15_i32_63 = arith.constant 15 : i32
    %c0_i32_64 = arith.constant 0 : i32
    %112 = tpu.memref_slice %arg8[%c15_i32_63, %c0_i32_64] : memref<16x128xf32, #tpu.memory_space<vmem>> -> memref<1x128xf32, #tpu.memory_space<vmem>>
    %113 = tpu.memref_slice %arg9[%c15_i32_61] : memref<16x!tpu.dma_semaphore, #tpu.memory_space<semaphore_mem>> -> memref<1x!tpu.dma_semaphore, #tpu.memory_space<semaphore_mem>>
    %114 = tpu.memref_squeeze %113 : memref<1x!tpu.dma_semaphore, #tpu.memory_space<semaphore_mem>> -> memref<!tpu.dma_semaphore, #tpu.memory_space<semaphore_mem>>
    tpu.enqueue_dma source(%111 : memref<1x128xf32, #tpu.memory_space<any>>) target(%112 : memref<1x128xf32, #tpu.memory_space<vmem>>) target_semaphore(%114 : memref<!tpu.dma_semaphore, #tpu.memory_space<semaphore_mem>>)
    %c0_i32_65 = arith.constant 0 : i32
    %c0_i32_66 = arith.constant 0 : i32
    %c0_i32_67 = arith.constant 0 : i32
    %115 = tpu.memref_slice %arg3[%c0_i32_66, %c0_i32_67] : memref<512x128xf32, #tpu.memory_space<any>> -> memref<1x128xf32, #tpu.memory_space<any>>
    %c0_i32_68 = arith.constant 0 : i32
    %c0_i32_69 = arith.constant 0 : i32
    %116 = tpu.memref_slice %arg8[%c0_i32_68, %c0_i32_69] : memref<16x128xf32, #tpu.memory_space<vmem>> -> memref<1x128xf32, #tpu.memory_space<vmem>>
    %117 = tpu.memref_slice %arg9[%c0_i32_65] : memref<16x!tpu.dma_semaphore, #tpu.memory_space<semaphore_mem>> -> memref<1x!tpu.dma_semaphore, #tpu.memory_space<semaphore_mem>>
    %118 = tpu.memref_squeeze %117 : memref<1x!tpu.dma_semaphore, #tpu.memory_space<semaphore_mem>> -> memref<!tpu.dma_semaphore, #tpu.memory_space<semaphore_mem>>
    tpu.wait_dma2 semaphore(%118 : memref<!tpu.dma_semaphore, #tpu.memory_space<semaphore_mem>>) src(%115 : memref<1x128xf32, #tpu.memory_space<any>>) dst(%116 : memref<1x128xf32, #tpu.memory_space<vmem>>)
    %c1_i32_70 = arith.constant 1 : i32
    %c0_i32_71 = arith.constant 0 : i32
    %c0_i32_72 = arith.constant 0 : i32
    %119 = tpu.memref_slice %arg3[%c0_i32_71, %c0_i32_72] : memref<512x128xf32, #tpu.memory_space<any>> -> memref<1x128xf32, #tpu.memory_space<any>>
    %c1_i32_73 = arith.constant 1 : i32
    %c0_i32_74 = arith.constant 0 : i32
    %120 = tpu.memref_slice %arg8[%c1_i32_73, %c0_i32_74] : memref<16x128xf32, #tpu.memory_space<vmem>> -> memref<1x128xf32, #tpu.memory_space<vmem>>
    %121 = tpu.memref_slice %arg9[%c1_i32_70] : memref<16x!tpu.dma_semaphore, #tpu.memory_space<semaphore_mem>> -> memref<1x!tpu.dma_semaphore, #tpu.memory_space<semaphore_mem>>
    %122 = tpu.memref_squeeze %121 : memref<1x!tpu.dma_semaphore, #tpu.memory_space<semaphore_mem>> -> memref<!tpu.dma_semaphore, #tpu.memory_space<semaphore_mem>>
    tpu.wait_dma2 semaphore(%122 : memref<!tpu.dma_semaphore, #tpu.memory_space<semaphore_mem>>) src(%119 : memref<1x128xf32, #tpu.memory_space<any>>) dst(%120 : memref<1x128xf32, #tpu.memory_space<vmem>>)
    %c2_i32_75 = arith.constant 2 : i32
    %c0_i32_76 = arith.constant 0 : i32
    %c0_i32_77 = arith.constant 0 : i32
    %123 = tpu.memref_slice %arg3[%c0_i32_76, %c0_i32_77] : memref<512x128xf32, #tpu.memory_space<any>> -> memref<1x128xf32, #tpu.memory_space<any>>
    %c2_i32_78 = arith.constant 2 : i32
    %c0_i32_79 = arith.constant 0 : i32
    %124 = tpu.memref_slice %arg8[%c2_i32_78, %c0_i32_79] : memref<16x128xf32, #tpu.memory_space<vmem>> -> memref<1x128xf32, #tpu.memory_space<vmem>>
    %125 = tpu.memref_slice %arg9[%c2_i32_75] : memref<16x!tpu.dma_semaphore, #tpu.memory_space<semaphore_mem>> -> memref<1x!tpu.dma_semaphore, #tpu.memory_space<semaphore_mem>>
    %126 = tpu.memref_squeeze %125 : memref<1x!tpu.dma_semaphore, #tpu.memory_space<semaphore_mem>> -> memref<!tpu.dma_semaphore, #tpu.memory_space<semaphore_mem>>
    tpu.wait_dma2 semaphore(%126 : memref<!tpu.dma_semaphore, #tpu.memory_space<semaphore_mem>>) src(%123 : memref<1x128xf32, #tpu.memory_space<any>>) dst(%124 : memref<1x128xf32, #tpu.memory_space<vmem>>)
    %c3_i32_80 = arith.constant 3 : i32
    %c0_i32_81 = arith.constant 0 : i32
    %c0_i32_82 = arith.constant 0 : i32
    %127 = tpu.memref_slice %arg3[%c0_i32_81, %c0_i32_82] : memref<512x128xf32, #tpu.memory_space<any>> -> memref<1x128xf32, #tpu.memory_space<any>>
    %c3_i32_83 = arith.constant 3 : i32
    %c0_i32_84 = arith.constant 0 : i32
    %128 = tpu.memref_slice %arg8[%c3_i32_83, %c0_i32_84] : memref<16x128xf32, #tpu.memory_space<vmem>> -> memref<1x128xf32, #tpu.memory_space<vmem>>
    %129 = tpu.memref_slice %arg9[%c3_i32_80] : memref<16x!tpu.dma_semaphore, #tpu.memory_space<semaphore_mem>> -> memref<1x!tpu.dma_semaphore, #tpu.memory_space<semaphore_mem>>
    %130 = tpu.memref_squeeze %129 : memref<1x!tpu.dma_semaphore, #tpu.memory_space<semaphore_mem>> -> memref<!tpu.dma_semaphore, #tpu.memory_space<semaphore_mem>>
    tpu.wait_dma2 semaphore(%130 : memref<!tpu.dma_semaphore, #tpu.memory_space<semaphore_mem>>) src(%127 : memref<1x128xf32, #tpu.memory_space<any>>) dst(%128 : memref<1x128xf32, #tpu.memory_space<vmem>>)
    %c4_i32_85 = arith.constant 4 : i32
    %c0_i32_86 = arith.constant 0 : i32
    %c0_i32_87 = arith.constant 0 : i32
    %131 = tpu.memref_slice %arg3[%c0_i32_86, %c0_i32_87] : memref<512x128xf32, #tpu.memory_space<any>> -> memref<1x128xf32, #tpu.memory_space<any>>
    %c4_i32_88 = arith.constant 4 : i32
    %c0_i32_89 = arith.constant 0 : i32
    %132 = tpu.memref_slice %arg8[%c4_i32_88, %c0_i32_89] : memref<16x128xf32, #tpu.memory_space<vmem>> -> memref<1x128xf32, #tpu.memory_space<vmem>>
    %133 = tpu.memref_slice %arg9[%c4_i32_85] : memref<16x!tpu.dma_semaphore, #tpu.memory_space<semaphore_mem>> -> memref<1x!tpu.dma_semaphore, #tpu.memory_space<semaphore_mem>>
    %134 = tpu.memref_squeeze %133 : memref<1x!tpu.dma_semaphore, #tpu.memory_space<semaphore_mem>> -> memref<!tpu.dma_semaphore, #tpu.memory_space<semaphore_mem>>
    tpu.wait_dma2 semaphore(%134 : memref<!tpu.dma_semaphore, #tpu.memory_space<semaphore_mem>>) src(%131 : memref<1x128xf32, #tpu.memory_space<any>>) dst(%132 : memref<1x128xf32, #tpu.memory_space<vmem>>)
    %c5_i32_90 = arith.constant 5 : i32
    %c0_i32_91 = arith.constant 0 : i32
    %c0_i32_92 = arith.constant 0 : i32
    %135 = tpu.memref_slice %arg3[%c0_i32_91, %c0_i32_92] : memref<512x128xf32, #tpu.memory_space<any>> -> memref<1x128xf32, #tpu.memory_space<any>>
    %c5_i32_93 = arith.constant 5 : i32
    %c0_i32_94 = arith.constant 0 : i32
    %136 = tpu.memref_slice %arg8[%c5_i32_93, %c0_i32_94] : memref<16x128xf32, #tpu.memory_space<vmem>> -> memref<1x128xf32, #tpu.memory_space<vmem>>
    %137 = tpu.memref_slice %arg9[%c5_i32_90] : memref<16x!tpu.dma_semaphore, #tpu.memory_space<semaphore_mem>> -> memref<1x!tpu.dma_semaphore, #tpu.memory_space<semaphore_mem>>
    %138 = tpu.memref_squeeze %137 : memref<1x!tpu.dma_semaphore, #tpu.memory_space<semaphore_mem>> -> memref<!tpu.dma_semaphore, #tpu.memory_space<semaphore_mem>>
    tpu.wait_dma2 semaphore(%138 : memref<!tpu.dma_semaphore, #tpu.memory_space<semaphore_mem>>) src(%135 : memref<1x128xf32, #tpu.memory_space<any>>) dst(%136 : memref<1x128xf32, #tpu.memory_space<vmem>>)
    %c6_i32_95 = arith.constant 6 : i32
    %c0_i32_96 = arith.constant 0 : i32
    %c0_i32_97 = arith.constant 0 : i32
    %139 = tpu.memref_slice %arg3[%c0_i32_96, %c0_i32_97] : memref<512x128xf32, #tpu.memory_space<any>> -> memref<1x128xf32, #tpu.memory_space<any>>
    %c6_i32_98 = arith.constant 6 : i32
    %c0_i32_99 = arith.constant 0 : i32
    %140 = tpu.memref_slice %arg8[%c6_i32_98, %c0_i32_99] : memref<16x128xf32, #tpu.memory_space<vmem>> -> memref<1x128xf32, #tpu.memory_space<vmem>>
    %141 = tpu.memref_slice %arg9[%c6_i32_95] : memref<16x!tpu.dma_semaphore, #tpu.memory_space<semaphore_mem>> -> memref<1x!tpu.dma_semaphore, #tpu.memory_space<semaphore_mem>>
    %142 = tpu.memref_squeeze %141 : memref<1x!tpu.dma_semaphore, #tpu.memory_space<semaphore_mem>> -> memref<!tpu.dma_semaphore, #tpu.memory_space<semaphore_mem>>
    tpu.wait_dma2 semaphore(%142 : memref<!tpu.dma_semaphore, #tpu.memory_space<semaphore_mem>>) src(%139 : memref<1x128xf32, #tpu.memory_space<any>>) dst(%140 : memref<1x128xf32, #tpu.memory_space<vmem>>)
    %c7_i32_100 = arith.constant 7 : i32
    %c0_i32_101 = arith.constant 0 : i32
    %c0_i32_102 = arith.constant 0 : i32
    %143 = tpu.memref_slice %arg3[%c0_i32_101, %c0_i32_102] : memref<512x128xf32, #tpu.memory_space<any>> -> memref<1x128xf32, #tpu.memory_space<any>>
    %c7_i32_103 = arith.constant 7 : i32
    %c0_i32_104 = arith.constant 0 : i32
    %144 = tpu.memref_slice %arg8[%c7_i32_103, %c0_i32_104] : memref<16x128xf32, #tpu.memory_space<vmem>> -> memref<1x128xf32, #tpu.memory_space<vmem>>
    %145 = tpu.memref_slice %arg9[%c7_i32_100] : memref<16x!tpu.dma_semaphore, #tpu.memory_space<semaphore_mem>> -> memref<1x!tpu.dma_semaphore, #tpu.memory_space<semaphore_mem>>
    %146 = tpu.memref_squeeze %145 : memref<1x!tpu.dma_semaphore, #tpu.memory_space<semaphore_mem>> -> memref<!tpu.dma_semaphore, #tpu.memory_space<semaphore_mem>>
    tpu.wait_dma2 semaphore(%146 : memref<!tpu.dma_semaphore, #tpu.memory_space<semaphore_mem>>) src(%143 : memref<1x128xf32, #tpu.memory_space<any>>) dst(%144 : memref<1x128xf32, #tpu.memory_space<vmem>>)
    %c8_i32_105 = arith.constant 8 : i32
    %c0_i32_106 = arith.constant 0 : i32
    %c0_i32_107 = arith.constant 0 : i32
    %147 = tpu.memref_slice %arg3[%c0_i32_106, %c0_i32_107] : memref<512x128xf32, #tpu.memory_space<any>> -> memref<1x128xf32, #tpu.memory_space<any>>
    %c8_i32_108 = arith.constant 8 : i32
    %c0_i32_109 = arith.constant 0 : i32
    %148 = tpu.memref_slice %arg8[%c8_i32_108, %c0_i32_109] : memref<16x128xf32, #tpu.memory_space<vmem>> -> memref<1x128xf32, #tpu.memory_space<vmem>>
    %149 = tpu.memref_slice %arg9[%c8_i32_105] : memref<16x!tpu.dma_semaphore, #tpu.memory_space<semaphore_mem>> -> memref<1x!tpu.dma_semaphore, #tpu.memory_space<semaphore_mem>>
    %150 = tpu.memref_squeeze %149 : memref<1x!tpu.dma_semaphore, #tpu.memory_space<semaphore_mem>> -> memref<!tpu.dma_semaphore, #tpu.memory_space<semaphore_mem>>
    tpu.wait_dma2 semaphore(%150 : memref<!tpu.dma_semaphore, #tpu.memory_space<semaphore_mem>>) src(%147 : memref<1x128xf32, #tpu.memory_space<any>>) dst(%148 : memref<1x128xf32, #tpu.memory_space<vmem>>)
    %c9_i32_110 = arith.constant 9 : i32
    %c0_i32_111 = arith.constant 0 : i32
    %c0_i32_112 = arith.constant 0 : i32
    %151 = tpu.memref_slice %arg3[%c0_i32_111, %c0_i32_112] : memref<512x128xf32, #tpu.memory_space<any>> -> memref<1x128xf32, #tpu.memory_space<any>>
    %c9_i32_113 = arith.constant 9 : i32
    %c0_i32_114 = arith.constant 0 : i32
    %152 = tpu.memref_slice %arg8[%c9_i32_113, %c0_i32_114] : memref<16x128xf32, #tpu.memory_space<vmem>> -> memref<1x128xf32, #tpu.memory_space<vmem>>
    %153 = tpu.memref_slice %arg9[%c9_i32_110] : memref<16x!tpu.dma_semaphore, #tpu.memory_space<semaphore_mem>> -> memref<1x!tpu.dma_semaphore, #tpu.memory_space<semaphore_mem>>
    %154 = tpu.memref_squeeze %153 : memref<1x!tpu.dma_semaphore, #tpu.memory_space<semaphore_mem>> -> memref<!tpu.dma_semaphore, #tpu.memory_space<semaphore_mem>>
    tpu.wait_dma2 semaphore(%154 : memref<!tpu.dma_semaphore, #tpu.memory_space<semaphore_mem>>) src(%151 : memref<1x128xf32, #tpu.memory_space<any>>) dst(%152 : memref<1x128xf32, #tpu.memory_space<vmem>>)
    %c10_i32_115 = arith.constant 10 : i32
    %c0_i32_116 = arith.constant 0 : i32
    %c0_i32_117 = arith.constant 0 : i32
    %155 = tpu.memref_slice %arg3[%c0_i32_116, %c0_i32_117] : memref<512x128xf32, #tpu.memory_space<any>> -> memref<1x128xf32, #tpu.memory_space<any>>
    %c10_i32_118 = arith.constant 10 : i32
    %c0_i32_119 = arith.constant 0 : i32
    %156 = tpu.memref_slice %arg8[%c10_i32_118, %c0_i32_119] : memref<16x128xf32, #tpu.memory_space<vmem>> -> memref<1x128xf32, #tpu.memory_space<vmem>>
    %157 = tpu.memref_slice %arg9[%c10_i32_115] : memref<16x!tpu.dma_semaphore, #tpu.memory_space<semaphore_mem>> -> memref<1x!tpu.dma_semaphore, #tpu.memory_space<semaphore_mem>>
    %158 = tpu.memref_squeeze %157 : memref<1x!tpu.dma_semaphore, #tpu.memory_space<semaphore_mem>> -> memref<!tpu.dma_semaphore, #tpu.memory_space<semaphore_mem>>
    tpu.wait_dma2 semaphore(%158 : memref<!tpu.dma_semaphore, #tpu.memory_space<semaphore_mem>>) src(%155 : memref<1x128xf32, #tpu.memory_space<any>>) dst(%156 : memref<1x128xf32, #tpu.memory_space<vmem>>)
    %c11_i32_120 = arith.constant 11 : i32
    %c0_i32_121 = arith.constant 0 : i32
    %c0_i32_122 = arith.constant 0 : i32
    %159 = tpu.memref_slice %arg3[%c0_i32_121, %c0_i32_122] : memref<512x128xf32, #tpu.memory_space<any>> -> memref<1x128xf32, #tpu.memory_space<any>>
    %c11_i32_123 = arith.constant 11 : i32
    %c0_i32_124 = arith.constant 0 : i32
    %160 = tpu.memref_slice %arg8[%c11_i32_123, %c0_i32_124] : memref<16x128xf32, #tpu.memory_space<vmem>> -> memref<1x128xf32, #tpu.memory_space<vmem>>
    %161 = tpu.memref_slice %arg9[%c11_i32_120] : memref<16x!tpu.dma_semaphore, #tpu.memory_space<semaphore_mem>> -> memref<1x!tpu.dma_semaphore, #tpu.memory_space<semaphore_mem>>
    %162 = tpu.memref_squeeze %161 : memref<1x!tpu.dma_semaphore, #tpu.memory_space<semaphore_mem>> -> memref<!tpu.dma_semaphore, #tpu.memory_space<semaphore_mem>>
    tpu.wait_dma2 semaphore(%162 : memref<!tpu.dma_semaphore, #tpu.memory_space<semaphore_mem>>) src(%159 : memref<1x128xf32, #tpu.memory_space<any>>) dst(%160 : memref<1x128xf32, #tpu.memory_space<vmem>>)
    %c12_i32_125 = arith.constant 12 : i32
    %c0_i32_126 = arith.constant 0 : i32
    %c0_i32_127 = arith.constant 0 : i32
    %163 = tpu.memref_slice %arg3[%c0_i32_126, %c0_i32_127] : memref<512x128xf32, #tpu.memory_space<any>> -> memref<1x128xf32, #tpu.memory_space<any>>
    %c12_i32_128 = arith.constant 12 : i32
    %c0_i32_129 = arith.constant 0 : i32
    %164 = tpu.memref_slice %arg8[%c12_i32_128, %c0_i32_129] : memref<16x128xf32, #tpu.memory_space<vmem>> -> memref<1x128xf32, #tpu.memory_space<vmem>>
    %165 = tpu.memref_slice %arg9[%c12_i32_125] : memref<16x!tpu.dma_semaphore, #tpu.memory_space<semaphore_mem>> -> memref<1x!tpu.dma_semaphore, #tpu.memory_space<semaphore_mem>>
    %166 = tpu.memref_squeeze %165 : memref<1x!tpu.dma_semaphore, #tpu.memory_space<semaphore_mem>> -> memref<!tpu.dma_semaphore, #tpu.memory_space<semaphore_mem>>
    tpu.wait_dma2 semaphore(%166 : memref<!tpu.dma_semaphore, #tpu.memory_space<semaphore_mem>>) src(%163 : memref<1x128xf32, #tpu.memory_space<any>>) dst(%164 : memref<1x128xf32, #tpu.memory_space<vmem>>)
    %c13_i32_130 = arith.constant 13 : i32
    %c0_i32_131 = arith.constant 0 : i32
    %c0_i32_132 = arith.constant 0 : i32
    %167 = tpu.memref_slice %arg3[%c0_i32_131, %c0_i32_132] : memref<512x128xf32, #tpu.memory_space<any>> -> memref<1x128xf32, #tpu.memory_space<any>>
    %c13_i32_133 = arith.constant 13 : i32
    %c0_i32_134 = arith.constant 0 : i32
    %168 = tpu.memref_slice %arg8[%c13_i32_133, %c0_i32_134] : memref<16x128xf32, #tpu.memory_space<vmem>> -> memref<1x128xf32, #tpu.memory_space<vmem>>
    %169 = tpu.memref_slice %arg9[%c13_i32_130] : memref<16x!tpu.dma_semaphore, #tpu.memory_space<semaphore_mem>> -> memref<1x!tpu.dma_semaphore, #tpu.memory_space<semaphore_mem>>
    %170 = tpu.memref_squeeze %169 : memref<1x!tpu.dma_semaphore, #tpu.memory_space<semaphore_mem>> -> memref<!tpu.dma_semaphore, #tpu.memory_space<semaphore_mem>>
    tpu.wait_dma2 semaphore(%170 : memref<!tpu.dma_semaphore, #tpu.memory_space<semaphore_mem>>) src(%167 : memref<1x128xf32, #tpu.memory_space<any>>) dst(%168 : memref<1x128xf32, #tpu.memory_space<vmem>>)
    %c14_i32_135 = arith.constant 14 : i32
    %c0_i32_136 = arith.constant 0 : i32
    %c0_i32_137 = arith.constant 0 : i32
    %171 = tpu.memref_slice %arg3[%c0_i32_136, %c0_i32_137] : memref<512x128xf32, #tpu.memory_space<any>> -> memref<1x128xf32, #tpu.memory_space<any>>
    %c14_i32_138 = arith.constant 14 : i32
    %c0_i32_139 = arith.constant 0 : i32
    %172 = tpu.memref_slice %arg8[%c14_i32_138, %c0_i32_139] : memref<16x128xf32, #tpu.memory_space<vmem>> -> memref<1x128xf32, #tpu.memory_space<vmem>>
    %173 = tpu.memref_slice %arg9[%c14_i32_135] : memref<16x!tpu.dma_semaphore, #tpu.memory_space<semaphore_mem>> -> memref<1x!tpu.dma_semaphore, #tpu.memory_space<semaphore_mem>>
    %174 = tpu.memref_squeeze %173 : memref<1x!tpu.dma_semaphore, #tpu.memory_space<semaphore_mem>> -> memref<!tpu.dma_semaphore, #tpu.memory_space<semaphore_mem>>
    tpu.wait_dma2 semaphore(%174 : memref<!tpu.dma_semaphore, #tpu.memory_space<semaphore_mem>>) src(%171 : memref<1x128xf32, #tpu.memory_space<any>>) dst(%172 : memref<1x128xf32, #tpu.memory_space<vmem>>)
    %c15_i32_140 = arith.constant 15 : i32
    %c0_i32_141 = arith.constant 0 : i32
    %c0_i32_142 = arith.constant 0 : i32
    %175 = tpu.memref_slice %arg3[%c0_i32_141, %c0_i32_142] : memref<512x128xf32, #tpu.memory_space<any>> -> memref<1x128xf32, #tpu.memory_space<any>>
    %c15_i32_143 = arith.constant 15 : i32
    %c0_i32_144 = arith.constant 0 : i32
    %176 = tpu.memref_slice %arg8[%c15_i32_143, %c0_i32_144] : memref<16x128xf32, #tpu.memory_space<vmem>> -> memref<1x128xf32, #tpu.memory_space<vmem>>
    %177 = tpu.memref_slice %arg9[%c15_i32_140] : memref<16x!tpu.dma_semaphore, #tpu.memory_space<semaphore_mem>> -> memref<1x!tpu.dma_semaphore, #tpu.memory_space<semaphore_mem>>
    %178 = tpu.memref_squeeze %177 : memref<1x!tpu.dma_semaphore, #tpu.memory_space<semaphore_mem>> -> memref<!tpu.dma_semaphore, #tpu.memory_space<semaphore_mem>>
    tpu.wait_dma2 semaphore(%178 : memref<!tpu.dma_semaphore, #tpu.memory_space<semaphore_mem>>) src(%175 : memref<1x128xf32, #tpu.memory_space<any>>) dst(%176 : memref<1x128xf32, #tpu.memory_space<vmem>>)
    %c0 = arith.constant 0 : index
    %c0_145 = arith.constant 0 : index
    %179 = vector.load %arg8[%c0, %c0_145] : memref<16x128xf32, #tpu.memory_space<vmem>>, vector<16x128xf32>
    %c0_146 = arith.constant 0 : index
    %c0_147 = arith.constant 0 : index
    %180 = vector.load %arg4[%c0_146, %c0_147] : memref<16x128xf32, #tpu.memory_space<vmem>>, vector<16x128xf32>
    %181 = arith.addf %179, %180 : vector<16x128xf32>
    %cst = arith.constant dense<0.000000e+00> : vector<16xf32>
    %182 = vector.multi_reduction <add>, %181, %cst [1] : vector<16x128xf32> to vector<16xf32>
    %183 = vector.shape_cast %182 : vector<16xf32> to vector<16x1xf32>
    %184 = arith.mulf %181, %181 : vector<16x128xf32>
    %cst_148 = arith.constant dense<0.000000e+00> : vector<16xf32>
    %185 = vector.multi_reduction <add>, %184, %cst_148 [1] : vector<16x128xf32> to vector<16xf32>
    %186 = vector.shape_cast %185 : vector<16xf32> to vector<16x1xf32>
    %cst_149 = arith.constant 7.812500e-03 : f32
    %187 = vector.broadcast %cst_149 : f32 to vector<16x1xf32>
    %188 = arith.mulf %183, %187 : vector<16x1xf32>
    %cst_150 = arith.constant 7.812500e-03 : f32
    %189 = vector.broadcast %cst_150 : f32 to vector<16x1xf32>
    %190 = arith.mulf %186, %189 : vector<16x1xf32>
    %191 = arith.mulf %188, %188 : vector<16x1xf32>
    %192 = arith.subf %190, %191 : vector<16x1xf32>
    %cst_151 = arith.constant 0.000000e+00 : f32
    %193 = vector.broadcast %cst_151 : f32 to vector<16x1xf32>
    %194 = arith.maximumf %192, %193 : vector<16x1xf32>
    %cst_152 = arith.constant 9.99999996E-13 : f32
    %195 = vector.broadcast %cst_152 : f32 to vector<16x1xf32>
    %196 = arith.addf %194, %195 : vector<16x1xf32>
    %197 = math.rsqrt %196 : vector<16x1xf32>
    %198 = vector.broadcast %188 : vector<16x1xf32> to vector<16x128xf32>
    %199 = arith.subf %181, %198 : vector<16x128xf32>
    %200 = vector.broadcast %197 : vector<16x1xf32> to vector<16x128xf32>
    %201 = arith.mulf %199, %200 : vector<16x128xf32>
    %c0_153 = arith.constant 0 : index
    %c0_154 = arith.constant 0 : index
    %202 = vector.load %arg5[%c0_153, %c0_154] : memref<1x128xf32, #tpu.memory_space<vmem>>, vector<1x128xf32>
    %203 = vector.broadcast %202 : vector<1x128xf32> to vector<16x128xf32>
    %204 = arith.mulf %201, %203 : vector<16x128xf32>
    %c0_155 = arith.constant 0 : index
    %c0_156 = arith.constant 0 : index
    %205 = vector.load %arg6[%c0_155, %c0_156] : memref<1x128xf32, #tpu.memory_space<vmem>>, vector<1x128xf32>
    %206 = vector.broadcast %205 : vector<1x128xf32> to vector<16x128xf32>
    %207 = arith.addf %204, %206 : vector<16x128xf32>
    %c0_157 = arith.constant 0 : index
    %c0_158 = arith.constant 0 : index
    %c0_159 = arith.constant 0 : index
    %208 = vector.load %arg7[%c0_157, %c0_158, %c0_159] : memref<1x16x128xf32, #tpu.memory_space<vmem>>, vector<1x16x128xf32>
    %209 = vector.shape_cast %208 : vector<1x16x128xf32> to vector<16x128xf32>
    %210 = vector.shape_cast %207 : vector<16x128xf32> to vector<1x16x128xf32>
    tpu.vector_store %arg7[%c0_157, %c0_158, %c0_159], %210 {strides = array<i32>} : memref<1x16x128xf32, #tpu.memory_space<vmem>>, vector<1x16x128xf32>,
    return
  }
  func.func @transform_1(%arg0: i32, %arg1: i32, %arg2: memref<32xi32, #tpu.memory_space<smem>>) -> (i32, i32) {
    %c0_i32 = arith.constant 0 : i32
    %c0_i32_0 = arith.constant 0 : i32
    return %arg0, %c0_i32 : i32, i32
  }
  func.func @transform_2(%arg0: i32, %arg1: i32, %arg2: memref<32xi32, #tpu.memory_space<smem>>) -> (i32, i32) {
    %c0_i32 = arith.constant 0 : i32
    %c0_i32_0 = arith.constant 0 : i32
    %c0_i32_1 = arith.constant 0 : i32
    return %c0_i32, %c0_i32_0 : i32, i32
  }
  func.func @transform_3(%arg0: i32, %arg1: i32, %arg2: memref<32xi32, #tpu.memory_space<smem>>) -> (i32, i32) {
    %c0_i32 = arith.constant 0 : i32
    %c0_i32_0 = arith.constant 0 : i32
    %c0_i32_1 = arith.constant 0 : i32
    return %c0_i32, %c0_i32_0 : i32, i32
  }
  func.func @transform_4(%arg0: i32, %arg1: i32, %arg2: memref<32xi32, #tpu.memory_space<smem>>) -> (i32, i32, i32) {
    %c0_i32 = arith.constant 0 : i32
    %c0_i32_0 = arith.constant 0 : i32
    return %arg1, %arg0, %c0_i32 : i32, i32, i32
  }
}

</mosaic_0001>

<bundles_post_ra>
// kernel: tpu_custom_call.1
= control target key start
LH: loop header
LB: loop body
LE: loop exit
PB: predicated region body
PF: predicated region fallthrough
CT: control target
= control target key end

     0   :  { %s1474_s21 = smov [#allocation5]   ;;  %s1826_s0 = inlined_call_operand.hbm [shape: s32[32], index: 0, kind: input, shape index: {}]   ;;  %s1827_s1 = inlined_call_operand.hbm [shape: f32[512,128], index: 1, kind: input, shape index: {}]   ;;  %s1828_s2 = inlined_call_operand.hbm [shape: f32[16,128], index: 2, kind: input, shape index: {}]   ;;  %s1829_s3 = inlined_call_operand.vmem [shape: f32[1,128], index: 3, kind: input, shape index: {}]   ;;  %s1830_s4 = inlined_call_operand.vmem [shape: f32[1,128], index: 4, kind: input, shape index: {}]   ;;  %s1831_s5 = inlined_call_operand.hbm [shape: f32[2,16,128], index: 5, kind: output, shape index: {}]  }
   0x1   :  { %1839 = sst [smem:[#allocation66_spill]] %s1828_s2  ;;  %s11_s20 = sshll.u32 %s1826_s0, 4  ;;  %s12_s20 = int_to_ptr.hbm [resolvable:$true] %s11_s20 }
   0x2   :  { %14 = dma.hbm_to_smem %s12_s20, 16, %s1474_s21, [#allocation4] }
   0x3   :  { %1408 = dma.done.wait [#allocation4], 16 }
   0x4   :  { %1409 = vsyncadd [#allocation4], 4294967280 }
   0x5   :  { %17 = sfence }
   0x6   :  { %18 = vsyncpa [#allocation7], 0 }
   0x7   :  { %19 = vsyncpa [#allocation8], 0 }
   0x8   :  { %21 = vsyncpa [#allocation8 + $0x1], 0  ;;  %s1529_s22 = smov 0   ;;  %s1531_s23 = smov 0  }
   0x9   :  { %s1533_s24 = smov 0   ;;  %s1535_s25 = smov 0  }
   0xa   :  { %s1537_s26 = smov 0   ;;  %s1539_s0 = smov 0  }
   0xb LB: > { %1840 = sst [smem:[#allocation63_spill]] %s1468_s26  ;;  %s807_s27 = sadd.s32 4294967295, %s1472_s0   ;;  %s1472_s0 = sphi %s1539_s0, %s27_s0   ;;  %s1468_s26 = sphi %s1537_s26, %s1859_s26   ;;  %s1464_s25 = sphi %s1535_s25, %s1858_s25   ;;  %s1460_s24 = sphi %s1533_s24, %s1862_s24   ;;  %s1456_s23 = sphi %s1531_s23, %s1861_s23   ;;  %s1452_s22 = sphi %s1529_s22, %s1860_s22  }
   0xc   : > { %s808_s28 = sadd.s32 4294967294, %s1472_s0   ;;  %s36_s29 = sadd.s32 1, %s1468_s26 }
   0xd   : > { %s116_s30 = sadd.s32 1, %s1460_s24  ;;  %p37_p0 = scmp.ge.s32.totalorder %s36_s29, 2 }
   0xe   : > { %p126_p1 = scmp.ne.s32.totalorder %s1460_s24, %s1456_s23  ;;  %p127_p2 = scmp.eq.s32.totalorder %s807_s27, 1 }
   0xf   : > { %p132_p3 = scmp.ne.s32.totalorder %s1456_s23, %s1452_s22  ;;  %s1864_s29 = smov (%p37_p0, %s36_s29), 0 }
  0x10   : > { %1841 = sst [smem:[#allocation64_spill]] %s1864_s29  ;;  %p1569_p4 = por %p127_p2, %p126_p1 }
  0x11   : > { %p133_p5 = scmp.eq.s32.totalorder %s808_s28, 1  ;;  %s111_s7 = ssub.s32 %s1468_s26, %s1864_s29 }
  0x12   : > { %p809_p6 = scmp.ge.s32.totalorder %s1472_s0, 1  ;;  %p114_p7 = scmp.eq.s32.totalorder %s111_s7, 0 }
  0x13   : > { %p1576_p8 = por %p133_p5, %p132_p3  ;;  %p140_p9 = scmp.lt.s32.totalorder %s1472_s0, 3 }
  0x14   : > { %s1582_s9 = scalar_select %p114_p7, %s1460_s24, %s116_s30  }
  0x15   : > { %p141_p10 = pnand %p809_p6, %p140_p9  ;;  %p851_p11 = scmp.eq.s32.totalorder %s807_s27, 0 }
  0x16   : > { %s1844_s2 = sld [smem:[#allocation66_spill]]  ;;  %s1475_s13 = smov [#allocation6]  }
  0x17   : > { %p843_p12 = pneg %p141_p10  ;;  %s156_s14 = sshll.u32 %s1475_s13, 4  ;;  %s157_s14 = int_to_ptr.vmem [resolvable:$true] %s156_s14 }
  0x18   : > { %s1476_s15 = smov 128   ;;  %s1477_s16 = smov 8  }
  0x19   : > { %p844_p13 = pnand %p851_p11, %p843_p12  ;;  %178 = sbr.rel (%p141_p10) target bundleno = 447 (0x1bf), region = 32 }
  0x1c   : > { %s154_s12 = sshll.u32 %s1844_s2, 4  ;;  %s155_s12 = int_to_ptr.hbm [resolvable:$true] %s154_s12 }
  0x1d   : > { %846 = dma.hbm_to_vmem [thread:$0]  (!%p844_p13), %s155_s12, 256, %s157_s14, [#allocation7], %s1476_s15, %s1476_s15, %s1477_s16  }
  0x1e   : > { %1411 = dma.done.wait (%p851_p11), [#allocation7], 256  }
  0x1f   : > { %1413 = vsyncadd (%p851_p11), [#allocation7], 4294967040  ;;  %s1832_s17 = sand.u32 1, %s1456_s23   ;;  %s1589_s18 = sshll.u32 %s1464_s25, 4 }
  0x20   : > { %s1593_s19 = sshll.u32 %s1832_s17, 4  ;;  %s203_s20 = sld [smem:[#allocation5 + %s1589_s18]] }
  0x21   : > { %s1478_s21 = smov [#allocation2]   ;;  %s218_s28 = sadd.s32 1, %s1589_s18 }
  0x22   : > { %s214_s27 = sshll.u32 %s1478_s21, 4  ;;  %s219_s30 = sld [smem:[#allocation5 + %s218_s28]]  ;;  %s215_s27 = int_to_ptr.vmem [resolvable:$true] %s214_s27 }
  0x23   : > { %s236_s7 = sadd.s32 2, %s1589_s18  ;;  %s1479_s10 = smov [#allocation2 + $0x1]  }
  0x24   : > { %s1598_s11 = sshll.u32 %s1479_s10, 4  ;;  %s237_s12 = sld [smem:[#allocation5 + %s236_s7]]  ;;  %s233_s11 = int_to_ptr.vmem [resolvable:$true] %s1598_s11 }
  0x25   : > { %s1480_s16 = smov [#allocation2 + $0x2]   ;;  %s1609_s10 = scalar_lea.hbm %s1827_s1, 512 }
  0x26   : > { %s204_s14 = scalar_lea.hbm %s1827_s1, %s203_s20  ;;  %s1604_s17 = sshll.u32 %s1480_s16, 4  ;;  %s251_s17 = int_to_ptr.vmem [resolvable:$true] %s1604_s17 }
  0x27   : > { %s212_s15 = sshll.u32 %s204_s14, 4  ;;  %s213_s15 = int_to_ptr.hbm [resolvable:$true] %s212_s15 }
  0x28   : > { %s972_s21 = sshra.s32 %s213_s15, 4  ;;  %s973_s21 = int_to_ptr.hbm [resolvable:$true] %s972_s21 }
  0x29   : > { %s974_s2 = scalar_lea.hbm %s973_s21, 1  ;;  %p977_p1 = scmp.lt.s32.totalorder %s973_s21, %s1827_s1 }
  0x2a   : > { %p975_p0 = scmp.ne.s32.totalorder %s973_s21, %s974_s2  ;;  %p978_p2 = scmp.lt.s32.totalorder %s1609_s10, %s974_s2 }
  0x2c   : > { %p979_p3 = por %p978_p2, %p977_p1 }
  0x2e   : > { %p980_p5 = pnand %p979_p3, %p975_p0 }
  0x30   : > { %983 = shalt.err (!%p980_p5)  }
  0x31   : > { %217 = dma.hbm_to_vmem [thread:$0]  %s213_s15, 16, %s215_s27, [#allocation3] }
  0x32   : > { %s220_s13 = scalar_lea.hbm %s1827_s1, %s219_s30  ;;  %s238_s28 = scalar_lea.hbm %s1827_s1, %s237_s12 }
  0x33   : > { %s230_s29 = sshll.u32 %s220_s13, 4  ;;  %s248_s26 = sshll.u32 %s238_s28, 4  ;;  %s231_s29 = int_to_ptr.hbm [resolvable:$true] %s230_s29  ;;  %s249_s26 = int_to_ptr.hbm [resolvable:$true] %s248_s26 }
  0x34   : > { %s996_s21 = sshra.s32 %s231_s29, 4  ;;  %s997_s21 = int_to_ptr.hbm [resolvable:$true] %s996_s21 }
  0x35   : > { %s998_s2 = scalar_lea.hbm %s997_s21, 1  ;;  %p1001_p7 = scmp.lt.s32.totalorder %s997_s21, %s1827_s1 }
  0x36   : > { %p999_p6 = scmp.ne.s32.totalorder %s997_s21, %s998_s2  ;;  %p1002_p9 = scmp.lt.s32.totalorder %s1609_s10, %s998_s2 }
  0x38   : > { %p1003_p10 = por %p1002_p9, %p1001_p7 }
  0x3a   : > { %p1004_p11 = pnand %p1003_p10, %p999_p6 }
  0x3c   : > { %1007 = shalt.err (!%p1004_p11)  }
  0x3d   : > { %235 = dma.hbm_to_vmem [thread:$0]  %s231_s29, 16, %s233_s11, [#allocation3 + $0x1] }
  0x3e   : > { %s254_s30 = sadd.s32 3, %s1589_s18  ;;  %s1020_s12 = sshra.s32 %s249_s26, 4  ;;  %s1021_s12 = int_to_ptr.hbm [resolvable:$true] %s1020_s12 }
  0x3f   : > { %s1022_s15 = scalar_lea.hbm %s1021_s12, 1  ;;  %p1025_p13 = scmp.lt.s32.totalorder %s1021_s12, %s1827_s1 }
  0x40   : > { %p1023_p12 = scmp.ne.s32.totalorder %s1021_s12, %s1022_s15  ;;  %p1026_p0 = scmp.lt.s32.totalorder %s1609_s10, %s1022_s15 }
  0x42   : > { %p1027_p1 = por %p1026_p0, %p1025_p13 }
  0x44   : > { %p1028_p2 = pnand %p1027_p1, %p1023_p12 }
  0x46   : > { %1031 = shalt.err (!%p1028_p2)  }
  0x47   : > { %253 = dma.hbm_to_vmem [thread:$0]  %s249_s26, 16, %s251_s17, [#allocation3 + $0x2] }
  0x48   : > { %s255_s13 = sld [smem:[#allocation5 + %s254_s30]]  ;;  %s1481_s14 = smov [#allocation2 + $0x3]  }
  0x49   : > { %s268_s11 = sshll.u32 %s1481_s14, 4  ;;  %s272_s29 = sadd.s32 4, %s1589_s18  ;;  %s269_s11 = int_to_ptr.vmem [resolvable:$true] %s268_s11 }
  0x4a   : > { %s273_s16 = sld [smem:[#allocation5 + %s272_s29]]  ;;  %s290_s28 = sadd.s32 5, %s1589_s18 }
  0x4b   : > { %s1482_s21 = smov [#allocation2 + $0x4]   ;;  %s291_s7 = sld [smem:[#allocation5 + %s290_s28]] }
  0x4c   : > { %s1635_s2 = sshll.u32 %s1482_s21, 4  ;;  %s1483_s26 = smov [#allocation2 + $0x5]  }
  0x4d   : > { %1845 = sst [smem:[#allocation65_spill]] %s1635_s2  ;;  %s1641_s15 = sshll.u32 %s1483_s26, 4  ;;  %s305_s15 = int_to_ptr.vmem [resolvable:$true] %s1641_s15 }
  0x4e   : > { %s256_s17 = scalar_lea.hbm %s1827_s1, %s255_s13 }
  0x4f   : > { %s266_s30 = sshll.u32 %s256_s17, 4  ;;  %s267_s30 = int_to_ptr.hbm [resolvable:$true] %s266_s30 }
  0x50   : > { %s274_s14 = scalar_lea.hbm %s1827_s1, %s273_s16  ;;  %s1044_s29 = sshra.s32 %s267_s30, 4  ;;  %s1045_s29 = int_to_ptr.hbm [resolvable:$true] %s1044_s29 }
  0x51   : > { %s1046_s21 = scalar_lea.hbm %s1045_s29, 1  ;;  %p1049_p5 = scmp.lt.s32.totalorder %s1045_s29, %s1827_s1 }
  0x52   : > { %p1047_p3 = scmp.ne.s32.totalorder %s1045_s29, %s1046_s21  ;;  %p1050_p6 = scmp.lt.s32.totalorder %s1609_s10, %s1046_s21 }
  0x54   : > { %p1051_p7 = por %p1050_p6, %p1049_p5 }
  0x56   : > { %p1052_p9 = pnand %p1051_p7, %p1047_p3 }
  0x58   : > { %1055 = shalt.err (!%p1052_p9)  }
  0x59   : > { %271 = dma.hbm_to_vmem [thread:$0]  %s267_s30, 16, %s269_s11, [#allocation3 + $0x3] }
  0x5a   : > { %s284_s13 = sshll.u32 %s274_s14, 4  ;;  %s292_s17 = scalar_lea.hbm %s1827_s1, %s291_s7  ;;  %s285_s13 = int_to_ptr.hbm [resolvable:$true] %s284_s13 }
  0x5b   : > { %s302_s16 = sshll.u32 %s292_s17, 4  ;;  %s1068_s26 = sshra.s32 %s285_s13, 4  ;;  %s1069_s26 = int_to_ptr.hbm [resolvable:$true] %s1068_s26  ;;  %s303_s16 = int_to_ptr.hbm [resolvable:$true] %s302_s16 }
  0x5c   : > { %s1070_s20 = scalar_lea.hbm %s1069_s26, 1  ;;  %p1073_p11 = scmp.lt.s32.totalorder %s1069_s26, %s1827_s1 }
  0x5d   : > { %p1071_p10 = scmp.ne.s32.totalorder %s1069_s26, %s1070_s20  ;;  %p1074_p12 = scmp.lt.s32.totalorder %s1609_s10, %s1070_s20 }
  0x5f   : > { %p1075_p13 = por %p1074_p12, %p1073_p11 }
  0x61   : > { %p1076_p0 = pnand %p1075_p13, %p1071_p10 }
  0x63   : > { %1079 = shalt.err (!%p1076_p0)  }
  0x64   : > { %s1846_s11 = sld [smem:[#allocation65_spill]]  ;;  %s308_s7 = sadd.s32 6, %s1589_s18 }
  0x65   : > { %s1092_s14 = sshra.s32 %s303_s16, 4  ;;  %s1093_s14 = int_to_ptr.hbm [resolvable:$true] %s1092_s14 }
  0x66   : > { %s1094_s29 = scalar_lea.hbm %s1093_s14, 1  ;;  %p1097_p2 = scmp.lt.s32.totalorder %s1093_s14, %s1827_s1 }
  0x67   : > { %p1095_p1 = scmp.ne.s32.totalorder %s1093_s14, %s1094_s29  ;;  %p1098_p3 = scmp.lt.s32.totalorder %s1609_s10, %s1094_s29 }
  0x69   : > { %p1099_p5 = por %p1098_p3, %p1097_p2 }
  0x6a   : > { %s1847_s30 = int_to_ptr.vmem [resolvable:$true] %s1846_s11 }
  0x6b   : > { %289 = dma.hbm_to_vmem [thread:$0]  %s285_s13, 16, %s1847_s30, [#allocation3 + $0x4] }
  0x6c   : > { %p1100_p6 = pnand %p1099_p5, %p1095_p1 }
  0x6e   : > { %1103 = shalt.err (!%p1100_p6)  }
  0x6f   : > { %307 = dma.hbm_to_vmem [thread:$0]  %s303_s16, 16, %s305_s15, [#allocation3 + $0x5] }
  0x70   : > { %s309_s13 = sld [smem:[#allocation5 + %s308_s7]]  ;;  %s1484_s27 = smov [#allocation2 + $0x6]  }
  0x71   : > { %s322_s12 = sshll.u32 %s1484_s27, 4  ;;  %s326_s17 = sadd.s32 7, %s1589_s18  ;;  %s323_s12 = int_to_ptr.vmem [resolvable:$true] %s322_s12 }
  0x72   : > { %s327_s26 = sld [smem:[#allocation5 + %s326_s17]]  ;;  %s344_s20 = sadd.s32 8, %s1589_s18 }
  0x73   : > { %s1485_s25 = smov [#allocation2 + $0x7]   ;;  %s345_s11 = sld [smem:[#allocation5 + %s344_s20]] }
  0x74   : > { %s1669_s2 = sshll.u32 %s1485_s25, 4  ;;  %s1486_s21 = smov [#allocation2 + $0x8]  }
  0x75   : > { %1848 = sst [smem:[#allocation65_spill]] %s1669_s2  ;;  %s1675_s15 = sshll.u32 %s1486_s21, 4  ;;  %s359_s15 = int_to_ptr.vmem [resolvable:$true] %s1675_s15 }
  0x76   : > { %s310_s29 = scalar_lea.hbm %s1827_s1, %s309_s13 }
  0x77   : > { %s320_s16 = sshll.u32 %s310_s29, 4  ;;  %s321_s16 = int_to_ptr.hbm [resolvable:$true] %s320_s16 }
  0x78   : > { %s328_s27 = scalar_lea.hbm %s1827_s1, %s327_s26  ;;  %s1116_s17 = sshra.s32 %s321_s16, 4  ;;  %s1117_s17 = int_to_ptr.hbm [resolvable:$true] %s1116_s17 }
  0x79   : > { %s1118_s25 = scalar_lea.hbm %s1117_s17, 1  ;;  %p1121_p9 = scmp.lt.s32.totalorder %s1117_s17, %s1827_s1 }
  0x7a   : > { %p1119_p7 = scmp.ne.s32.totalorder %s1117_s17, %s1118_s25  ;;  %p1122_p10 = scmp.lt.s32.totalorder %s1609_s10, %s1118_s25 }
  0x7c   : > { %p1123_p11 = por %p1122_p10, %p1121_p9 }
  0x7e   : > { %p1124_p12 = pnand %p1123_p11, %p1119_p7 }
  0x80   : > { %1127 = shalt.err (!%p1124_p12)  }
  0x81   : > { %325 = dma.hbm_to_vmem [thread:$0]  %s321_s16, 16, %s323_s12, [#allocation3 + $0x6] }
  0x82   : > { %s338_s13 = sshll.u32 %s328_s27, 4  ;;  %s346_s29 = scalar_lea.hbm %s1827_s1, %s345_s11  ;;  %s339_s13 = int_to_ptr.hbm [resolvable:$true] %s338_s13 }
  0x83   : > { %s356_s26 = sshll.u32 %s346_s29, 4  ;;  %s1140_s21 = sshra.s32 %s339_s13, 4  ;;  %s1141_s21 = int_to_ptr.hbm [resolvable:$true] %s1140_s21  ;;  %s357_s26 = int_to_ptr.hbm [resolvable:$true] %s356_s26 }
  0x84   : > { %s1142_s7 = scalar_lea.hbm %s1141_s21, 1  ;;  %p1145_p0 = scmp.lt.s32.totalorder %s1141_s21, %s1827_s1 }
  0x85   : > { %p1143_p13 = scmp.ne.s32.totalorder %s1141_s21, %s1142_s7  ;;  %p1146_p1 = scmp.lt.s32.totalorder %s1609_s10, %s1142_s7 }
  0x87   : > { %p1147_p2 = por %p1146_p1, %p1145_p0 }
  0x89   : > { %p1148_p3 = pnand %p1147_p2, %p1143_p13 }
  0x8b   : > { %1151 = shalt.err (!%p1148_p3)  }
  0x8c   : > { %s1849_s12 = sld [smem:[#allocation65_spill]]  ;;  %s362_s11 = sadd.s32 9, %s1589_s18 }
  0x8d   : > { %s1164_s27 = sshra.s32 %s357_s26, 4  ;;  %s1165_s27 = int_to_ptr.hbm [resolvable:$true] %s1164_s27 }
  0x8e   : > { %s1166_s17 = scalar_lea.hbm %s1165_s27, 1  ;;  %p1169_p6 = scmp.lt.s32.totalorder %s1165_s27, %s1827_s1 }
  0x8f   : > { %p1167_p5 = scmp.ne.s32.totalorder %s1165_s27, %s1166_s17  ;;  %p1170_p7 = scmp.lt.s32.totalorder %s1609_s10, %s1166_s17 }
  0x91   : > { %p1171_p9 = por %p1170_p7, %p1169_p6 }
  0x92   : > { %s1850_s16 = int_to_ptr.vmem [resolvable:$true] %s1849_s12 }
  0x93   : > { %343 = dma.hbm_to_vmem [thread:$0]  %s339_s13, 16, %s1850_s16, [#allocation3 + $0x7] }
  0x94   : > { %p1172_p10 = pnand %p1171_p9, %p1167_p5 }
  0x96   : > { %1175 = shalt.err (!%p1172_p10)  }
  0x97   : > { %361 = dma.hbm_to_vmem [thread:$0]  %s357_s26, 16, %s359_s15, [#allocation3 + $0x8] }
  0x98   : > { %s363_s13 = sld [smem:[#allocation5 + %s362_s11]]  ;;  %s1487_s30 = smov [#allocation2 + $0x9]  }
  0x99   : > { %s376_s14 = sshll.u32 %s1487_s30, 4  ;;  %s380_s29 = sadd.s32 10, %s1589_s18  ;;  %s377_s14 = int_to_ptr.vmem [resolvable:$true] %s376_s14 }
  0x9a   : > { %s381_s21 = sld [smem:[#allocation5 + %s380_s29]]  ;;  %s398_s7 = sadd.s32 11, %s1589_s18 }
  0x9b   : > { %s1488_s28 = smov [#allocation2 + $0xa]   ;;  %s399_s12 = sld [smem:[#allocation5 + %s398_s7]] }
  0x9c   : > { %s1703_s2 = sshll.u32 %s1488_s28, 4  ;;  %s1489_s25 = smov [#allocation2 + $0xb]  }
  0x9d   : > { %1851 = sst [smem:[#allocation65_spill]] %s1703_s2  ;;  %s1709_s15 = sshll.u32 %s1489_s25, 4  ;;  %s413_s15 = int_to_ptr.vmem [resolvable:$true] %s1709_s15 }
  0x9e   : > { %s364_s17 = scalar_lea.hbm %s1827_s1, %s363_s13 }
  0x9f   : > { %s374_s26 = sshll.u32 %s364_s17, 4  ;;  %s375_s26 = int_to_ptr.hbm [resolvable:$true] %s374_s26 }
  0xa0   : > { %s382_s30 = scalar_lea.hbm %s1827_s1, %s381_s21  ;;  %s1188_s29 = sshra.s32 %s375_s26, 4  ;;  %s1189_s29 = int_to_ptr.hbm [resolvable:$true] %s1188_s29 }
  0xa1   : > { %s1190_s28 = scalar_lea.hbm %s1189_s29, 1  ;;  %p1193_p12 = scmp.lt.s32.totalorder %s1189_s29, %s1827_s1 }
  0xa2   : > { %p1191_p11 = scmp.ne.s32.totalorder %s1189_s29, %s1190_s28  ;;  %p1194_p13 = scmp.lt.s32.totalorder %s1609_s10, %s1190_s28 }
  0xa4   : > { %p1195_p0 = por %p1194_p13, %p1193_p12 }
  0xa6   : > { %p1196_p1 = pnand %p1195_p0, %p1191_p11 }
  0xa8   : > { %1199 = shalt.err (!%p1196_p1)  }
  0xa9   : > { %379 = dma.hbm_to_vmem [thread:$0]  %s375_s26, 16, %s377_s14, [#allocation3 + $0x9] }
  0xaa   : > { %s392_s13 = sshll.u32 %s382_s30, 4  ;;  %s400_s17 = scalar_lea.hbm %s1827_s1, %s399_s12  ;;  %s393_s13 = int_to_ptr.hbm [resolvable:$true] %s392_s13 }
  0xab   : > { %s410_s21 = sshll.u32 %s400_s17, 4  ;;  %s1212_s25 = sshra.s32 %s393_s13, 4  ;;  %s1213_s25 = int_to_ptr.hbm [resolvable:$true] %s1212_s25  ;;  %s411_s21 = int_to_ptr.hbm [resolvable:$true] %s410_s21 }
  0xac   : > { %s1214_s11 = scalar_lea.hbm %s1213_s25, 1  ;;  %p1217_p3 = scmp.lt.s32.totalorder %s1213_s25, %s1827_s1 }
  0xad   : > { %p1215_p2 = scmp.ne.s32.totalorder %s1213_s25, %s1214_s11  ;;  %p1218_p5 = scmp.lt.s32.totalorder %s1609_s10, %s1214_s11 }
  0xaf   : > { %p1219_p6 = por %p1218_p5, %p1217_p3 }
  0xb1   : > { %p1220_p7 = pnand %p1219_p6, %p1215_p2 }
  0xb3   : > { %1223 = shalt.err (!%p1220_p7)  }
  0xb4   : > { %s1852_s14 = sld [smem:[#allocation65_spill]]  ;;  %s416_s12 = sadd.s32 12, %s1589_s18 }
  0xb5   : > { %s1236_s30 = sshra.s32 %s411_s21, 4  ;;  %s1237_s30 = int_to_ptr.hbm [resolvable:$true] %s1236_s30 }
  0xb6   : > { %s1238_s29 = scalar_lea.hbm %s1237_s30, 1  ;;  %p1241_p10 = scmp.lt.s32.totalorder %s1237_s30, %s1827_s1 }
  0xb7   : > { %p1239_p9 = scmp.ne.s32.totalorder %s1237_s30, %s1238_s29  ;;  %p1242_p11 = scmp.lt.s32.totalorder %s1609_s10, %s1238_s29 }
  0xb9   : > { %p1243_p12 = por %p1242_p11, %p1241_p10 }
  0xba   : > { %s1853_s26 = int_to_ptr.vmem [resolvable:$true] %s1852_s14 }
  0xbb   : > { %397 = dma.hbm_to_vmem [thread:$0]  %s393_s13, 16, %s1853_s26, [#allocation3 + $0xa] }
  0xbc   : > { %p1244_p13 = pnand %p1243_p12, %p1239_p9 }
  0xbe   : > { %1247 = shalt.err (!%p1244_p13)  }
  0xbf   : > { %415 = dma.hbm_to_vmem [thread:$0]  %s411_s21, 16, %s413_s15, [#allocation3 + $0xb] }
  0xc0   : > { %s417_s13 = sld [smem:[#allocation5 + %s416_s12]]  ;;  %s1490_s16 = smov [#allocation2 + $0xc]  }
  0xc1   : > { %s430_s27 = sshll.u32 %s1490_s16, 4  ;;  %s434_s17 = sadd.s32 13, %s1589_s18  ;;  %s431_s27 = int_to_ptr.vmem [resolvable:$true] %s430_s27 }
  0xc2   : > { %s435_s25 = sld [smem:[#allocation5 + %s434_s17]]  ;;  %s452_s11 = sadd.s32 14, %s1589_s18 }
  0xc3   : > { %s1491_s20 = smov [#allocation2 + $0xd]   ;;  %s453_s14 = sld [smem:[#allocation5 + %s452_s11]] }
  0xc4   : > { %s1737_s2 = sshll.u32 %s1491_s20, 4  ;;  %s1492_s28 = smov [#allocation2 + $0xe]  }
  0xc5   : > { %1854 = sst [smem:[#allocation65_spill]] %s1737_s2  ;;  %s1743_s15 = sshll.u32 %s1492_s28, 4  ;;  %s467_s15 = int_to_ptr.vmem [resolvable:$true] %s1743_s15 }
  0xc6   : > { %s418_s29 = scalar_lea.hbm %s1827_s1, %s417_s13 }
  0xc7   : > { %s428_s21 = sshll.u32 %s418_s29, 4  ;;  %s429_s21 = int_to_ptr.hbm [resolvable:$true] %s428_s21 }
  0xc8   : > { %s436_s16 = scalar_lea.hbm %s1827_s1, %s435_s25  ;;  %s1260_s17 = sshra.s32 %s429_s21, 4  ;;  %s1261_s17 = int_to_ptr.hbm [resolvable:$true] %s1260_s17 }
  0xc9   : > { %s1262_s20 = scalar_lea.hbm %s1261_s17, 1  ;;  %p1265_p1 = scmp.lt.s32.totalorder %s1261_s17, %s1827_s1 }
  0xca   : > { %p1263_p0 = scmp.ne.s32.totalorder %s1261_s17, %s1262_s20  ;;  %p1266_p2 = scmp.lt.s32.totalorder %s1609_s10, %s1262_s20 }
  0xcc   : > { %p1267_p3 = por %p1266_p2, %p1265_p1 }
  0xce   : > { %p1268_p5 = pnand %p1267_p3, %p1263_p0 }
  0xd0   : > { %1271 = shalt.err (!%p1268_p5)  }
  0xd1   : > { %433 = dma.hbm_to_vmem [thread:$0]  %s429_s21, 16, %s431_s27, [#allocation3 + $0xc] }
  0xd2   : > { %s446_s13 = sshll.u32 %s436_s16, 4  ;;  %s454_s29 = scalar_lea.hbm %s1827_s1, %s453_s14  ;;  %s447_s13 = int_to_ptr.hbm [resolvable:$true] %s446_s13 }
  0xd3   : > { %s464_s25 = sshll.u32 %s454_s29, 4  ;;  %s1284_s28 = sshra.s32 %s447_s13, 4  ;;  %s1285_s28 = int_to_ptr.hbm [resolvable:$true] %s1284_s28  ;;  %s465_s25 = int_to_ptr.hbm [resolvable:$true] %s464_s25 }
  0xd4   : > { %s1286_s12 = scalar_lea.hbm %s1285_s28, 1  ;;  %p1289_p7 = scmp.lt.s32.totalorder %s1285_s28, %s1827_s1 }
  0xd5   : > { %p1287_p6 = scmp.ne.s32.totalorder %s1285_s28, %s1286_s12  ;;  %p1290_p9 = scmp.lt.s32.totalorder %s1609_s10, %s1286_s12 }
  0xd7   : > { %p1291_p10 = por %p1290_p9, %p1289_p7 }
  0xd9   : > { %p1292_p11 = pnand %p1291_p10, %p1287_p6 }
  0xdb   : > { %1295 = shalt.err (!%p1292_p11)  }
  0xdc   : > { %s1855_s27 = sld [smem:[#allocation65_spill]]  ;;  %s470_s14 = sadd.s32 15, %s1589_s18 }
  0xdd   : > { %s1308_s16 = sshra.s32 %s465_s25, 4  ;;  %s1309_s16 = int_to_ptr.hbm [resolvable:$true] %s1308_s16 }
  0xde   : > { %s1310_s17 = scalar_lea.hbm %s1309_s16, 1  ;;  %p1313_p13 = scmp.lt.s32.totalorder %s1309_s16, %s1827_s1 }
  0xdf   : > { %p1311_p12 = scmp.ne.s32.totalorder %s1309_s16, %s1310_s17  ;;  %p1314_p0 = scmp.lt.s32.totalorder %s1609_s10, %s1310_s17 }
  0xe1   : > { %p1315_p1 = por %p1314_p0, %p1313_p13 }
  0xe2   : > { %s1856_s21 = int_to_ptr.vmem [resolvable:$true] %s1855_s27 }
  0xe3   : > { %451 = dma.hbm_to_vmem [thread:$0]  %s447_s13, 16, %s1856_s21, [#allocation3 + $0xd] }
  0xe4   : > { %p1316_p2 = pnand %p1315_p1, %p1311_p12 }
  0xe6   : > { %1319 = shalt.err (!%p1316_p2)  }
  0xe7   : > { %469 = dma.hbm_to_vmem [thread:$0]  %s465_s25, 16, %s467_s15, [#allocation3 + $0xe] }
  0xe8   : > { %s471_s26 = sld [smem:[#allocation5 + %s470_s14]]  ;;  %s1493_s13 = smov [#allocation2 + $0xf]  }
  0xe9   : > { %s484_s30 = sshll.u32 %s1493_s13, 4  ;;  %s485_s30 = int_to_ptr.vmem [resolvable:$true] %s484_s30 }
  0xee   : > { %s472_s12 = scalar_lea.hbm %s1827_s1, %s471_s26 }
  0xef   : > { %s482_s7 = sshll.u32 %s472_s12, 4  ;;  %s483_s7 = int_to_ptr.hbm [resolvable:$true] %s482_s7 }
  0xf0   : > { %s1332_s2 = sshra.s32 %s483_s7, 4  ;;  %s1333_s2 = int_to_ptr.hbm [resolvable:$true] %s1332_s2 }
  0xf1   : > { %s1334_s27 = scalar_lea.hbm %s1333_s2, 1  ;;  %p1337_p5 = scmp.lt.s32.totalorder %s1333_s2, %s1827_s1 }
  0xf2   : > { %p1335_p3 = scmp.ne.s32.totalorder %s1333_s2, %s1334_s27  ;;  %p1338_p6 = scmp.lt.s32.totalorder %s1609_s10, %s1334_s27 }
  0xf4   : > { %p1339_p7 = por %p1338_p6, %p1337_p5 }
  0xf6   : > { %p1340_p9 = pnand %p1339_p7, %p1335_p3 }
  0xf8   : > { %1343 = shalt.err (!%p1340_p9)  }
  0xf9   : > { %487 = dma.hbm_to_vmem [thread:$0]  %s483_s7, 16, %s485_s30, [#allocation3 + $0xf] }
  0xfa   : > { %s1777_s15 = scalar_lea.vmem [#allocation9], %s1593_s19 }
  0xfb   : > { %1414 = dma.done.wait [#allocation3], 16 }
  0xfc   : > { %1415 = vsyncadd [#allocation3], 4294967280 }
  0xfd   : > { %1416 = dma.done.wait [#allocation3 + $0x1], 16 }
  0xfe   : > { %1417 = vsyncadd [#allocation3 + $0x1], 4294967280 }
  0xff   : > { %1418 = dma.done.wait [#allocation3 + $0x2], 16 }
 0x100   : > { %1419 = vsyncadd [#allocation3 + $0x2], 4294967280 }
 0x101   : > { %1420 = dma.done.wait [#allocation3 + $0x3], 16 }
 0x102   : > { %1421 = vsyncadd [#allocation3 + $0x3], 4294967280 }
 0x103   : > { %1422 = dma.done.wait [#allocation3 + $0x4], 16 }
 0x104   : > { %1423 = vsyncadd [#allocation3 + $0x4], 4294967280 }
 0x105   : > { %1424 = dma.done.wait [#allocation3 + $0x5], 16 }
 0x106   : > { %1425 = vsyncadd [#allocation3 + $0x5], 4294967280 }
 0x107   : > { %1426 = dma.done.wait [#allocation3 + $0x6], 16 }
 0x108   : > { %1427 = vsyncadd [#allocation3 + $0x6], 4294967280 }
 0x109   : > { %1428 = dma.done.wait [#allocation3 + $0x7], 16 }
 0x10a   : > { %1429 = vsyncadd [#allocation3 + $0x7], 4294967280 }
 0x10b   : > { %1430 = dma.done.wait [#allocation3 + $0x8], 16 }
 0x10c   : > { %1431 = vsyncadd [#allocation3 + $0x8], 4294967280 }
 0x10d   : > { %1432 = dma.done.wait [#allocation3 + $0x9], 16 }
 0x10e   : > { %1433 = vsyncadd [#allocation3 + $0x9], 4294967280 }
 0x10f   : > { %1434 = dma.done.wait [#allocation3 + $0xa], 16 }
 0x110   : > { %1435 = vsyncadd [#allocation3 + $0xa], 4294967280 }
 0x111   : > { %1436 = dma.done.wait [#allocation3 + $0xb], 16 }
 0x112   : > { %1437 = vsyncadd [#allocation3 + $0xb], 4294967280 }
 0x113   : > { %1438 = dma.done.wait [#allocation3 + $0xc], 16 }
 0x114   : > { %1439 = vsyncadd [#allocation3 + $0xc], 4294967280 }
 0x115   : > { %1440 = dma.done.wait [#allocation3 + $0xd], 16 }
 0x116   : > { %1441 = vsyncadd [#allocation3 + $0xd], 4294967280 }
 0x117   : > { %1442 = dma.done.wait [#allocation3 + $0xe], 16 }
 0x118   : > { %1443 = vsyncadd [#allocation3 + $0xe], 4294967280 }
 0x119   : > { %1444 = dma.done.wait [#allocation3 + $0xf], 16 }
 0x11a   : > { %1445 = vsyncadd [#allocation3 + $0xf], 4294967280  ;;  %v521_v0 = vld [vmem:[#allocation2] sm:$0xff]  ;;  %v523_v1 = vld [vmem:[#allocation6] sm:$0xff]  ;;  %s601_s11 = scalar_lea.hbm %s1831_s5, %s1589_s18  ;;  %s602_s26 = sshll.u32 %s1777_s15, 4  ;;  %s603_s26 = int_to_ptr.vmem [resolvable:$true] %s602_s26 }
 0x11b   : > { %v525_v2 = vadd.f32 %v523_v1, %v521_v0  ;;  %v522_v3 = vld [vmem:[#allocation2 + $0x8] sm:$0xff]  ;;  %v524_v4 = vld [vmem:[#allocation6 + $0x8] sm:$0xff]  ;;  %v924_v32 = vld [vmem:[%s1829_s3] ss:$0 sm:$0xff]  ;;  %s604_s13 = sshll.u32 %s601_s11, 4  ;;  %s1857_s30 = sand.u32 1, %s1456_s23   ;;  %s605_s13 = int_to_ptr.hbm [resolvable:$true] %s604_s13 }
 0x11c   : > { %v526_v6 = vadd.f32 %v524_v4, %v522_v3  ;;  %v925_v35 = vld [vmem:[%s1830_s4] ss:$0 sm:$0xff]  ;;  %s588_s29 = scalar_lea.sflag [#allocation8], %s1857_s30  ;;  %s1370_s28 = sshra.s32 %s605_s13, 4  ;;  %s1371_s28 = int_to_ptr.hbm [resolvable:$true] %s1370_s28 }
 0x11d   : > { %527 = vadd.xlane.f32.xlu0 %v525_v2  ;;  %v531_v5 = vmul.f32 %v525_v2, %v525_v2  ;;  %s1372_s12 = scalar_lea.hbm %s1371_s28, 16  ;;  %s1376_s2 = scalar_lea.hbm %s1831_s5, 32 }
 0x11e   : > { %v532_v7 = vmul.f32 %v526_v6, %v526_v6  ;;  %p1373_p10 = scmp.ne.s32.totalorder %s1371_s28, %s1372_s12  ;;  %p1377_p13 = scmp.lt.s32.totalorder %s1371_s28, %s1831_s5 }
 0x11f   : > { %533 = vadd.xlane.f32.xlu1 %v531_v5  ;;  %p1378_p0 = scmp.lt.s32.totalorder %s1376_s2, %s1372_s12 }
 0x120   : > { %p1374_p11 = pnand %p1373_p10, %p1569_p4 }
 0x121   : > { %p1379_p1 = por %p1378_p0, %p1377_p13 }
 0x122   : > { %p1375_p12 = pneg %p1374_p11 }
 0x124   : > { %p1380_p2 = pnand %p1379_p1, %p1375_p12 }
 0x125   : > { %529 = vadd.xlane.f32.xlu0 %v526_v6 }
 0x127   : > { %535 = vadd.xlane.f32.xlu1 %v532_v7 }
 0x190   : > { %v528_v8 = vpop.xlane.xlu0 %527 }
 0x191   : > { %v537_v9 = vmul.f32 0.0078125, %v528_v8 }
 0x192   : > { %v534_v10 = vpop.xlane.xlu1 %533 }
 0x193   : > { %v541_v11 = vmul.f32 %v537_v9, %v537_v9  ;;  %v539_v12 = vmul.f32 0.0078125, %v534_v10  ;;  %v569_v31 = vsub.f32 %v525_v2, %v537_v9 }
 0x195   : > { %v543_v13 = vsub.f32 %v539_v12, %v541_v11 }
 0x197   : > { %v545_v14 = vmax.f32 %v543_v13, 0.0 }
 0x198   : > { %v530_v15 = vpop.xlane.xlu0 %529 }
 0x199   : > { %v547_v16 = vadd.f32 1e-12, %v545_v14  ;;  %v538_v17 = vmul.f32 0.0078125, %v530_v15 }
 0x19a   : > { %v536_v18 = vpop.xlane.xlu1 %535 }
 0x19b   : > { %926 = vrsqrt.f32 %v547_v16  ;;  %v542_v19 = vmul.f32 %v538_v17, %v538_v17  ;;  %v540_v20 = vmul.f32 0.0078125, %v536_v18  ;;  %vm555_vm1 = vweird.f32 %v547_v16 }
 0x19c   : > { %v570_v43 = vsub.f32 %v526_v6, %v538_v17 }
 0x19d   : > { %v544_v21 = vsub.f32 %v540_v20, %v542_v19 }
 0x19f   : > { %v546_v22 = vmax.f32 %v544_v21, 0.0 }
 0x1a1   : > { %v927_v23 = vpop.eup %926  ;;  %v548_v25 = vadd.f32 1e-12, %v546_v22 }
 0x1a2   : > { %v550_v24 = vmul.f32 %v927_v23, %v547_v16  ;;  %vm556_vm0 = vweird.f32 %v927_v23 }
 0x1a3   : > { %928 = vrsqrt.f32 %v548_v25  ;;  %vm557_vm2 = vmor %vm555_vm1, %vm556_vm0  ;;  %vm565_vm4 = vweird.f32 %v548_v25 }
 0x1a4   : > { %v551_v26 = vmul.f32 %v927_v23, %v550_v24 }
 0x1a6   : > { %v552_v27 = vmul.f32 0.5, %v551_v26 }
 0x1a8   : > { %v553_v28 = vsub.f32 1.5, %v552_v27 }
 0x1a9   : > { %v929_v29 = vpop.eup %928 }
 0x1aa   : > { %v554_v30 = vmul.f32 %v927_v23, %v553_v28  ;;  %v560_v33 = vmul.f32 %v929_v29, %v548_v25  ;;  %vm566_vm3 = vweird.f32 %v929_v29 }
 0x1ab   : > { %vm567_vm5 = vmor %vm565_vm4, %vm566_vm3 }
 0x1ac   : > { %v558_v34 = vsel %vm557_vm2, %v927_v23, %v554_v30  ;;  %v561_v37 = vmul.f32 %v929_v29, %v560_v33 }
 0x1ad   : > { %v571_v36 = vmul.f32 %v569_v31, %v558_v34 }
 0x1ae   : > { %v562_v39 = vmul.f32 0.5, %v561_v37 }
 0x1af   : > { %v577_v38 = vmul.f32 %v924_v32, %v571_v36 }
 0x1b0   : > { %v563_v41 = vsub.f32 1.5, %v562_v39 }
 0x1b1   : > { %v583_v40 = vadd.f32 %v925_v35, %v577_v38 }
 0x1b2   : > { %v564_v42 = vmul.f32 %v929_v29, %v563_v41 }
 0x1b3   : > { %585 = vst [vmem:[%s1777_s15] sm:$0xff] %v583_v40 }
 0x1b4   : > { %v568_v44 = vsel %vm567_vm5, %v929_v29, %v564_v42 }
 0x1b5   : > { %v572_v45 = vmul.f32 %v570_v43, %v568_v44 }
 0x1b7   : > { %v578_v46 = vmul.f32 %v924_v32, %v572_v45 }
 0x1b9   : > { %v584_v47 = vadd.f32 %v925_v35, %v578_v46 }
 0x1bb   : > { %586 = vst [vmem:[%s1777_s15 + $0x8] sm:$0xff] %v584_v47 }
 0x1bc   : > { %1383 = shalt.err (!%p1380_p2)
}
 0x1bd   : > { %s1494_s16 = smov 128   ;;  %s1495_s15 = smov 8  }
 0x1be   : > { %841 = dma.vmem_to_hbm [thread:$0]  (%p1569_p4), %s603_s26, 256, %s605_s13, %s588_s29, %s1494_s16, %s1494_s16, %s1495_s15  }
 0x1bf PF: > { %p853_p3 = scmp.ge.s32.totalorder %s1472_s0, 2  ;;  %s619_s19 = sand.u32 1, %s1452_s22  }
 0x1c0   : > { %s620_s10 = scalar_lea.sflag [#allocation8], %s619_s19 }
 0x1c1   : > { %p848_p5 = pnand %p853_p3, %p1576_p8 }
 0x1c3   : > { %p849_p6 = pneg %p848_p5 }
 0x1c5   : > { %1447 = dma.done.wait (%p849_p6), %s620_s10, 256  }
 0x1c6   : > { %1449 = vsyncadd (%p849_p6), %s620_s10, 4294967040  ;;  %s27_s0 = sadd.s32 1, %s1472_s0   ;;  %s1858_s25 = sld [smem:[#allocation63_spill]] }
 0x1c7   : > { %p24_p7 = scmp.ge.s32.totalorder %s27_s0, 4   ;;  %s1859_s26 = sld [smem:[#allocation64_spill]] }
 0x1c8   : > { %s1860_s22 = smov %s1456_s23  ;;  %s1861_s23 = smov %s1460_s24 }
 0x1c9   : > { %s1862_s24 = smov %s1582_s9  ;;  %26 = sbr.rel (!%p24_p7) target bundleno = 11 (0xb), region = 195 }
 0x1ce   :  { %626 = vsyncpa [#allocation7], 1 }
 0x1cf   :  { %628 = vsyncpa [#allocation7 + $0x1], 1 }
 0x1d0   :  { %629 = vsyncpa [#allocation8], 1 }
 0x1d1   :  { %631 = vsyncpa [#allocation8 + $0x1], 1 }
 0x1d2   :  { %632 = vsyncmov [#allocation3] }
 0x1d5   :  { %s633_s6 = vpop.sfrf %632 }
 0x1d6   :  { %p820_p4 = scmp.ne.s32.totalorder %s633_s6, 0 }
 0x1d8   :  { %637 = shalt.err (%p820_p4)  }
 0x1d9   :  { %639 = vsyncmov [#allocation3 + $0x1] }
 0x1dc   :  { %s640_s8 = vpop.sfrf %639 }
 0x1dd   :  { %p821_p8 = scmp.ne.s32.totalorder %s640_s8, 0 }
 0x1df   :  { %644 = shalt.err (%p821_p8)  }
 0x1e0   :  { %646 = vsyncmov [#allocation3 + $0x2] }
 0x1e3   :  { %s647_s9 = vpop.sfrf %646 }
 0x1e4   :  { %p822_p9 = scmp.ne.s32.totalorder %s647_s9, 0 }
 0x1e6   :  { %651 = shalt.err (%p822_p9)  }
 0x1e7   :  { %653 = vsyncmov [#allocation3 + $0x3] }
 0x1ea   :  { %s654_s14 = vpop.sfrf %653 }
 0x1eb   :  { %p823_p10 = scmp.ne.s32.totalorder %s654_s14, 0 }
 0x1ed   :  { %658 = shalt.err (%p823_p10)  }
 0x1ee   :  { %660 = vsyncmov [#allocation3 + $0x4] }
 0x1f1   :  { %s661_s1 = vpop.sfrf %660 }
 0x1f2   :  { %p824_p11 = scmp.ne.s32.totalorder %s661_s1, 0 }
 0x1f4   :  { %665 = shalt.err (%p824_p11)  }
 0x1f5   :  { %667 = vsyncmov [#allocation3 + $0x5] }
 0x1f8   :  { %s668_s3 = vpop.sfrf %667 }
 0x1f9   :  { %p825_p12 = scmp.ne.s32.totalorder %s668_s3, 0 }
 0x1fb   :  { %672 = shalt.err (%p825_p12)  }
 0x1fc   :  { %674 = vsyncmov [#allocation3 + $0x6] }
 0x1ff   :  { %s675_s4 = vpop.sfrf %674 }
 0x200   :  { %p826_p13 = scmp.ne.s32.totalorder %s675_s4, 0 }
 0x202   :  { %679 = shalt.err (%p826_p13)  }
 0x203   :  { %681 = vsyncmov [#allocation3 + $0x7] }
 0x206   :  { %s682_s5 = vpop.sfrf %681 }
 0x207   :  { %p827_p0 = scmp.ne.s32.totalorder %s682_s5, 0 }
 0x209   :  { %686 = shalt.err (%p827_p0)  }
 0x20a   :  { %688 = vsyncmov [#allocation3 + $0x8] }
 0x20d   :  { %s689_s22 = vpop.sfrf %688 }
 0x20e   :  { %p828_p1 = scmp.ne.s32.totalorder %s689_s22, 0 }
 0x210   :  { %693 = shalt.err (%p828_p1)  }
 0x211   :  { %695 = vsyncmov [#allocation3 + $0x9] }
 0x214   :  { %s696_s23 = vpop.sfrf %695 }
 0x215   :  { %p829_p2 = scmp.ne.s32.totalorder %s696_s23, 0 }
 0x217   :  { %700 = shalt.err (%p829_p2)  }
 0x218   :  { %702 = vsyncmov [#allocation3 + $0xa] }
 0x21b   :  { %s703_s24 = vpop.sfrf %702 }
 0x21c   :  { %p830_p3 = scmp.ne.s32.totalorder %s703_s24, 0 }
 0x21e   :  { %707 = shalt.err (%p830_p3)  }
 0x21f   :  { %709 = vsyncmov [#allocation3 + $0xb] }
 0x222   :  { %s710_s0 = vpop.sfrf %709 }
 0x223   :  { %p831_p5 = scmp.ne.s32.totalorder %s710_s0, 0 }
 0x225   :  { %714 = shalt.err (%p831_p5)  }
 0x226   :  { %716 = vsyncmov [#allocation3 + $0xc] }
 0x229   :  { %s717_s25 = vpop.sfrf %716 }
 0x22a   :  { %p832_p6 = scmp.ne.s32.totalorder %s717_s25, 0 }
 0x22c   :  { %721 = shalt.err (%p832_p6)  }
 0x22d   :  { %723 = vsyncmov [#allocation3 + $0xd] }
 0x230   :  { %s724_s17 = vpop.sfrf %723 }
 0x231   :  { %p833_p7 = scmp.ne.s32.totalorder %s724_s17, 0 }
 0x233   :  { %728 = shalt.err (%p833_p7)  }
 0x234   :  { %730 = vsyncmov [#allocation3 + $0xe] }
 0x237   :  { %s731_s20 = vpop.sfrf %730 }
 0x238   :  { %p834_p4 = scmp.ne.s32.totalorder %s731_s20, 0 }
 0x23a   :  { %735 = shalt.err (%p834_p4)  }
 0x23b   :  { %737 = vsyncmov [#allocation3 + $0xf] }
 0x23e   :  { %s738_s11 = vpop.sfrf %737 }
 0x23f   :  { %p835_p8 = scmp.ne.s32.totalorder %s738_s11, 0 }
 0x241   :  { %742 = shalt.err (%p835_p8)  }

</bundles_post_ra>
